<compile_context>
chip_gen: v7x
topology: tpu7x:2x2x1
jax: 0.10.0
libtpu: 0.0.40
codegen_flags: <defaults>
</compile_context>

<pallas_src>
import functools

import jax
import jax.numpy as jnp
from jax import lax
from jax.experimental import pallas as pl
from jax.experimental.pallas import tpu as pltpu

_EPS = 1e-7
_PI = 3.141592653589793


def _rcp(x):
    return pl.reciprocal(x, approx=True)


def _atan(x):
    """Elementwise arctangent (float32-accurate) from VPU/EUP primitives.

    Range reduction: |x|>1 -> pi/2 - atan(1/|x|); then z>tan(pi/8) ->
    pi/4 + atan((z-1)/(z+1)); odd Taylor polynomial on |u|<=0.4142.
    """
    ax = jnp.abs(x)
    big = ax > 1.0
    z = jnp.where(big, _rcp(jnp.maximum(ax, _EPS)), ax)
    t8 = 0.4142135623730951  # tan(pi/8)
    red = z > t8
    u = jnp.where(red, (z - 1.0) * _rcp(z + 1.0), z)
    u2 = u * u
    p = u * (1.0 + u2 * (-1.0 / 3.0 + u2 * (1.0 / 5.0 + u2 * (-1.0 / 7.0
            + u2 * (1.0 / 9.0 + u2 * (-1.0 / 11.0 + u2 * (1.0 / 13.0)))))))
    r = jnp.where(red, 0.25 * _PI + p, p)
    r = jnp.where(big, 0.5 * _PI - r, r)
    return jnp.where(x < 0.0, -r, r)


def _rowsum8(x, tile_rows):
    """(tile_rows, 128) -> (8, 128) partial sum via sublane-aligned slices."""
    acc = x[0:8, :]
    for k in range(1, tile_rows // 8):
        acc = acc + x[k * 8:(k + 1) * 8, :]
    return acc


def _bbox_loss_kernel(*refs, reg_max, use_dfl, tile_rows):
    if use_dfl:
        slab_ref, pd_ref, out_ref = refs
    else:
        slab_ref, out_ref = refs
        pd_ref = None

    # slab channels: 0-3 pred xyxy, 4-7 target xyxy, [8-9 anchor xy], last=weight
    b1_x1 = slab_ref[0]
    b1_y1 = slab_ref[1]
    b1_x2 = slab_ref[2]
    b1_y2 = slab_ref[3]
    b2_x1 = slab_ref[4]
    b2_y1 = slab_ref[5]
    b2_x2 = slab_ref[6]
    b2_y2 = slab_ref[7]
    weight = slab_ref[10 if use_dfl else 8]      # zero on padded / background anchors

    w1 = b1_x2 - b1_x1
    h1 = b1_y2 - b1_y1 + _EPS
    w2 = b2_x2 - b2_x1
    h2 = b2_y2 - b2_y1 + _EPS

    inter = (jnp.maximum(jnp.minimum(b1_x2, b2_x2) - jnp.maximum(b1_x1, b2_x1), 0.0) *
             jnp.maximum(jnp.minimum(b1_y2, b2_y2) - jnp.maximum(b1_y1, b2_y1), 0.0))
    union = w1 * h1 + w2 * h2 - inter + _EPS
    iou = inter * _rcp(union)

    cw = jnp.maximum(b1_x2, b2_x2) - jnp.minimum(b1_x1, b2_x1)
    ch = jnp.maximum(b1_y2, b2_y2) - jnp.minimum(b1_y1, b2_y1)
    c2 = cw * cw + ch * ch + _EPS
    rho2 = ((b2_x1 + b2_x2 - b1_x1 - b1_x2) ** 2 +
            (b2_y1 + b2_y2 - b1_y1 - b1_y2) ** 2) * 0.25
    d_at = _atan(w2 * _rcp(h2)) - _atan(w1 * _rcp(h1))
    v = (4.0 / (_PI * _PI)) * d_at * d_at
    alpha = v * _rcp(v - iou + (1.0 + _EPS))
    ciou = iou - (rho2 * _rcp(c2) + v * alpha)               # (tile_rows, 128)

    out_ref[0, 0] = _rowsum8((1.0 - ciou) * weight, tile_rows)

    if use_dfl:
        ax_ = slab_ref[8]
        ay_ = slab_ref[9]
        hi = reg_max - 0.01
        targets = (
            jnp.clip(ax_ - b2_x1, 0.0, hi),   # left
            jnp.clip(ay_ - b2_y1, 0.0, hi),   # top
            jnp.clip(b2_x2 - ax_, 0.0, hi),   # right
            jnp.clip(b2_y2 - ay_, 0.0, hi),   # bottom
        )
        nb = reg_max + 1
        # hoisted: JAX does not CSE broadcasted_iota across the 4-side loop
        iota = lax.broadcasted_iota(jnp.int32, (nb, tile_rows, 128), 0)
        dfl_sum = None
        for c in range(4):
            t = targets[c]                                    # (tile_rows, 128)
            tl_f = jnp.floor(t)
            tl_i = tl_f.astype(jnp.int32)
            wl = (tl_f + 1.0) - t
            wr = 1.0 - wl

            logits = pd_ref[c]                                # (nb, tile_rows, 128)
            # major-axis reductions: pure VPU elementwise, no cross-lane work
            m = jnp.max(logits, axis=0)
            lse = m + jnp.log(jnp.sum(jnp.exp(logits - m[None]), axis=0))
            # fused one-hot gather: wl*logit[tl] + wr*logit[tl+1]  (wl + wr = 1)
            sel = (jnp.where(iota == tl_i[None], wl[None], 0.0) +
                   jnp.where(iota == tl_i[None] + 1, wr[None], 0.0))
            gathered = jnp.sum(sel * logits, axis=0)
            ce = lse - gathered
            dfl_sum = ce if dfl_sum is None else dfl_sum + ce
        dfl = dfl_sum * 0.25                                  # mean over the 4 sides
        out_ref[0, 1] = _rowsum8(dfl * weight, tile_rows)
    else:
        out_ref[0, 1] = jnp.zeros((8, 128), jnp.float32)


@functools.partial(jax.jit, static_argnames=("reg_max", "use_dfl", "tile_rows"))
def bbox_loss(pred_dist, pred_bboxes, anchor_points, target_bboxes, target_scores,
              target_scores_sum, fg_mask, reg_max, use_dfl=False, tile_rows=None):
    B, A, _ = pred_bboxes.shape
    nb = reg_max + 1
    N = B * A
    if tile_rows is None:
        tile_rows = 8 if use_dfl else 16       # 1024 / 2048 anchors per grid step
    tile_n = tile_rows * 128
    n_pad = ((N + tile_n - 1) // tile_n) * tile_n
    pad = n_pad - N
    n_rows = n_pad // 128
    n_tiles = n_pad // tile_n

    f32 = jnp.float32
    # precomputed weight: target_scores.sum(-1) * fg_mask (zero outside fg / padding)
    weight = target_scores.sum(-1) * fg_mask.astype(target_scores.dtype)
    cols = [pred_bboxes.reshape(N, 4), target_bboxes.reshape(N, 4)]
    if use_dfl:
        ap_b = jnp.broadcast_to(anchor_points[None], (B, A, 2)).reshape(N, 2)
        cols.append(ap_b)
    cols.append(weight.reshape(N, 1))
    slab = jnp.concatenate(cols, axis=-1).astype(f32)         # (N, 9 or 11)
    n_ch = slab.shape[-1]
    slab = jnp.pad(slab, ((0, pad), (0, 0)))                  # zero tail -> weight 0
    slab = slab.reshape(n_rows, 128, n_ch).transpose(2, 0, 1)  # (n_ch, n_rows, 128)

    in_specs = [pl.BlockSpec((n_ch, tile_rows, 128), lambda i: (0, i, 0))]
    args = [slab]
    if use_dfl:
        # TODO(synk): emit pred_dist upstream in (4, reg_max+1, anchors) layout to
        # avoid this full-data relayout copy in the wrapper.
        pd = pred_dist.reshape(N, 4, nb).astype(f32)
        pd = jnp.pad(pd, ((0, pad), (0, 0), (0, 0)))
        pd = pd.reshape(n_rows, 128, 4, nb).transpose(2, 3, 0, 1)  # (4, nb, n_rows, 128)
        in_specs.append(pl.BlockSpec((4, nb, tile_rows, 128), lambda i: (0, 0, i, 0)))
        args.append(pd)

    kern = functools.partial(_bbox_loss_kernel, reg_max=reg_max, use_dfl=use_dfl,
                             tile_rows=tile_rows)
    partials = pl.pallas_call(
        kern,
        out_shape=jax.ShapeDtypeStruct((n_tiles, 2, 8, 128), jnp.float32),
        grid=(n_tiles,),
        in_specs=in_specs,
        out_specs=pl.BlockSpec((1, 2, 8, 128), lambda i: (i, 0, 0, 0)),
        compiler_params=pltpu.CompilerParams(dimension_semantics=("parallel",)),
    )(*args)

    sums = partials.sum(axis=(0, 2, 3))                       # (2,)
    loss_iou = sums[0] / target_scores_sum
    loss_dfl = sums[1] / target_scores_sum if use_dfl else jnp.float32(0.0)
    return loss_iou, loss_dfl


def reference(pred_dist, pred_bboxes, anchor_points, target_bboxes, target_scores,
              target_scores_sum, fg_mask, reg_max, use_dfl):
    """Pure-JAX reference mirroring the PyTorch module (masked-sum form)."""
    eps = 1e-7
    m = fg_mask.astype(jnp.float32)
    weight = target_scores.sum(-1) * m
    b1_x1, b1_y1, b1_x2, b1_y2 = jnp.split(pred_bboxes, 4, axis=-1)
    b2_x1, b2_y1, b2_x2, b2_y2 = jnp.split(target_bboxes, 4, axis=-1)
    w1, h1 = b1_x2 - b1_x1, b1_y2 - b1_y1 + eps
    w2, h2 = b2_x2 - b2_x1, b2_y2 - b2_y1 + eps
    inter = (jnp.clip(jnp.minimum(b1_x2, b2_x2) - jnp.maximum(b1_x1, b2_x1), 0) *
             jnp.clip(jnp.minimum(b1_y2, b2_y2) - jnp.maximum(b1_y1, b2_y1), 0))
    union = w1 * h1 + w2 * h2 - inter + eps
    iou = inter / union
    cw = jnp.maximum(b1_x2, b2_x2) - jnp.minimum(b1_x1, b2_x1)
    ch = jnp.maximum(b1_y2, b2_y2) - jnp.minimum(b1_y1, b2_y1)
    c2 = cw ** 2 + ch ** 2 + eps
    rho2 = ((b2_x1 + b2_x2 - b1_x1 - b1_x2) ** 2 +
            (b2_y1 + b2_y2 - b1_y1 - b1_y2) ** 2) / 4
    v = (4 / jnp.pi ** 2) * (jnp.arctan(w2 / h2) - jnp.arctan(w1 / h1)) ** 2
    alpha = v / (v - iou + (1 + eps))
    ciou = (iou - (rho2 / c2 + v * alpha))[..., 0]
    loss_iou = ((1.0 - ciou) * weight).sum() / target_scores_sum
    if use_dfl:
        x1y1, x2y2 = target_bboxes[..., :2], target_bboxes[..., 2:]
        ap = anchor_points[None]
        tgt = jnp.clip(jnp.concatenate([ap - x1y1, x2y2 - ap], -1), 0, reg_max - 0.01)
        tl = jnp.floor(tgt).astype(jnp.int32)
        wl = (tl.astype(jnp.float32) + 1.0) - tgt
        wr = 1.0 - wl
        logits = pred_dist.reshape(*pred_dist.shape[:-1], 4, reg_max + 1)
        logp = jax.nn.log_softmax(logits, axis=-1)
        ce_tl = -jnp.take_along_axis(logp, tl[..., None], axis=-1)[..., 0]
        ce_tr = -jnp.take_along_axis(logp, (tl + 1)[..., None], axis=-1)[..., 0]
        dfl = (ce_tl * wl + ce_tr * wr).mean(-1)
        loss_dfl = (dfl * weight).sum() / target_scores_sum
    else:
        loss_dfl = jnp.float32(0.0)
    return loss_iou, loss_dfl


if __name__ == "__main__":
    key = jax.random.PRNGKey(0)
    B, A, C, R = 2, 64, 8, 16  # batch, anchors, classes, reg_max
    k0, k1, k2, k3, k4, k5 = jax.random.split(key, 6)

    anchor_points = jax.random.uniform(k0, (A, 2), jnp.float32, 4.0, 12.0)

    def make_boxes(k):
        d = jax.random.uniform(k, (B, A, 4), jnp.float32, 0.5, 8.0)
        ap = jnp.broadcast_to(anchor_points[None], (B, A, 2))
        return jnp.concatenate([ap - d[..., :2], ap + d[..., 2:]], -1)

    pred_bboxes = make_boxes(k1)
    target_bboxes = make_boxes(k2)
    target_scores = jax.random.uniform(k3, (B, A, C), jnp.float32)
    fg_mask = jax.random.bernoulli(k4, 0.6, (B, A))
    pred_dist = jax.random.normal(k5, (B, A, 4 * (R + 1)), jnp.float32)
    target_scores_sum = jnp.maximum(target_scores.sum(), 1.0)

    # --- use_dfl=True path ---
    loss_iou, loss_dfl = bbox_loss(pred_dist, pred_bboxes, anchor_points,
                                   target_bboxes, target_scores,
                                   target_scores_sum, fg_mask, R, use_dfl=True)
    jax.block_until_ready((loss_iou, loss_dfl))
    ref_iou, ref_dfl = reference(pred_dist, pred_bboxes, anchor_points,
                                 target_bboxes, target_scores,
                                 target_scores_sum, fg_mask, R, use_dfl=True)
    assert abs(float(loss_iou) - float(ref_iou)) < 2e-3 * max(1.0, abs(float(ref_iou)))
    assert abs(float(loss_dfl) - float(ref_dfl)) < 2e-3 * max(1.0, abs(float(ref_dfl)))

    # --- use_dfl=False path ---
    li2, ld2 = bbox_loss(pred_dist, pred_bboxes, anchor_points, target_bboxes,
                         target_scores, target_scores_sum, fg_mask, R, use_dfl=False)
    jax.block_until_ready((li2, ld2))
    r_i2, _ = reference(pred_dist, pred_bboxes, anchor_points, target_bboxes,
                        target_scores, target_scores_sum, fg_mask, R, use_dfl=False)
    assert abs(float(li2) - float(r_i2)) < 2e-3 * max(1.0, abs(float(r_i2)))
    assert float(ld2) == 0.0

    print("KERNEL_OK")
</pallas_src>

<mosaic_0001>
module attributes {stable_mosaic.version = 11 : i64} {
  func.func @_bbox_loss_kernel(%arg0: i32, %arg1: memref<11x8x128xf32, #tpu.memory_space<vmem>>, %arg2: memref<4x17x8x128xf32, #tpu.memory_space<vmem>>, %arg3: memref<1x2x8x128xf32, #tpu.memory_space<vmem>>) attributes {dimension_semantics = [#tpu.dimension_semantics<parallel>], iteration_bounds = array<i64: 1>, scalar_prefetch = 0 : i64, scratch_operands = 0 : i64, tpu.core_type = #tpu.core_type<tc>, window_params = [{transform_indices = @transform_0, window_bounds = array<i64: 11, 8, 128>}, {transform_indices = @transform_1, window_bounds = array<i64: 4, 17, 8, 128>}, {transform_indices = @transform_2, window_bounds = array<i64: 1, 2, 8, 128>}]} {
    %c0 = arith.constant 0 : index
    %c0_0 = arith.constant 0 : index
    %c0_1 = arith.constant 0 : index
    %0 = vector.load %arg1[%c0, %c0_0, %c0_1] : memref<11x8x128xf32, #tpu.memory_space<vmem>>, vector<1x8x128xf32>
    %1 = vector.shape_cast %0 : vector<1x8x128xf32> to vector<8x128xf32>
    %c1 = arith.constant 1 : index
    %c0_2 = arith.constant 0 : index
    %c0_3 = arith.constant 0 : index
    %2 = vector.load %arg1[%c1, %c0_2, %c0_3] : memref<11x8x128xf32, #tpu.memory_space<vmem>>, vector<1x8x128xf32>
    %3 = vector.shape_cast %2 : vector<1x8x128xf32> to vector<8x128xf32>
    %c2 = arith.constant 2 : index
    %c0_4 = arith.constant 0 : index
    %c0_5 = arith.constant 0 : index
    %4 = vector.load %arg1[%c2, %c0_4, %c0_5] : memref<11x8x128xf32, #tpu.memory_space<vmem>>, vector<1x8x128xf32>
    %5 = vector.shape_cast %4 : vector<1x8x128xf32> to vector<8x128xf32>
    %c3 = arith.constant 3 : index
    %c0_6 = arith.constant 0 : index
    %c0_7 = arith.constant 0 : index
    %6 = vector.load %arg1[%c3, %c0_6, %c0_7] : memref<11x8x128xf32, #tpu.memory_space<vmem>>, vector<1x8x128xf32>
    %7 = vector.shape_cast %6 : vector<1x8x128xf32> to vector<8x128xf32>
    %c4 = arith.constant 4 : index
    %c0_8 = arith.constant 0 : index
    %c0_9 = arith.constant 0 : index
    %8 = vector.load %arg1[%c4, %c0_8, %c0_9] : memref<11x8x128xf32, #tpu.memory_space<vmem>>, vector<1x8x128xf32>
    %9 = vector.shape_cast %8 : vector<1x8x128xf32> to vector<8x128xf32>
    %c5 = arith.constant 5 : index
    %c0_10 = arith.constant 0 : index
    %c0_11 = arith.constant 0 : index
    %10 = vector.load %arg1[%c5, %c0_10, %c0_11] : memref<11x8x128xf32, #tpu.memory_space<vmem>>, vector<1x8x128xf32>
    %11 = vector.shape_cast %10 : vector<1x8x128xf32> to vector<8x128xf32>
    %c6 = arith.constant 6 : index
    %c0_12 = arith.constant 0 : index
    %c0_13 = arith.constant 0 : index
    %12 = vector.load %arg1[%c6, %c0_12, %c0_13] : memref<11x8x128xf32, #tpu.memory_space<vmem>>, vector<1x8x128xf32>
    %13 = vector.shape_cast %12 : vector<1x8x128xf32> to vector<8x128xf32>
    %c7 = arith.constant 7 : index
    %c0_14 = arith.constant 0 : index
    %c0_15 = arith.constant 0 : index
    %14 = vector.load %arg1[%c7, %c0_14, %c0_15] : memref<11x8x128xf32, #tpu.memory_space<vmem>>, vector<1x8x128xf32>
    %15 = vector.shape_cast %14 : vector<1x8x128xf32> to vector<8x128xf32>
    %c10 = arith.constant 10 : index
    %c0_16 = arith.constant 0 : index
    %c0_17 = arith.constant 0 : index
    %16 = vector.load %arg1[%c10, %c0_16, %c0_17] : memref<11x8x128xf32, #tpu.memory_space<vmem>>, vector<1x8x128xf32>
    %17 = vector.shape_cast %16 : vector<1x8x128xf32> to vector<8x128xf32>
    %18 = arith.subf %5, %1 : vector<8x128xf32>
    %19 = arith.subf %7, %3 : vector<8x128xf32>
    %cst = arith.constant 1.000000e-07 : f32
    %20 = vector.broadcast %cst : f32 to vector<8x128xf32>
    %21 = arith.addf %19, %20 : vector<8x128xf32>
    %22 = arith.subf %13, %9 : vector<8x128xf32>
    %23 = arith.subf %15, %11 : vector<8x128xf32>
    %cst_18 = arith.constant 1.000000e-07 : f32
    %24 = vector.broadcast %cst_18 : f32 to vector<8x128xf32>
    %25 = arith.addf %23, %24 : vector<8x128xf32>
    %26 = arith.minimumf %5, %13 : vector<8x128xf32>
    %27 = arith.maximumf %1, %9 : vector<8x128xf32>
    %28 = arith.subf %26, %27 : vector<8x128xf32>
    %cst_19 = arith.constant 0.000000e+00 : f32
    %29 = vector.broadcast %cst_19 : f32 to vector<8x128xf32>
    %30 = arith.maximumf %28, %29 : vector<8x128xf32>
    %31 = arith.minimumf %7, %15 : vector<8x128xf32>
    %32 = arith.maximumf %3, %11 : vector<8x128xf32>
    %33 = arith.subf %31, %32 : vector<8x128xf32>
    %cst_20 = arith.constant 0.000000e+00 : f32
    %34 = vector.broadcast %cst_20 : f32 to vector<8x128xf32>
    %35 = arith.maximumf %33, %34 : vector<8x128xf32>
    %36 = arith.mulf %30, %35 : vector<8x128xf32>
    %37 = arith.mulf %18, %21 : vector<8x128xf32>
    %38 = arith.mulf %22, %25 : vector<8x128xf32>
    %39 = arith.addf %37, %38 : vector<8x128xf32>
    %40 = arith.subf %39, %36 : vector<8x128xf32>
    %cst_21 = arith.constant 1.000000e-07 : f32
    %41 = vector.broadcast %cst_21 : f32 to vector<8x128xf32>
    %42 = arith.addf %40, %41 : vector<8x128xf32>
    %43 = tpu.reciprocal %42 {approx = true} : vector<8x128xf32> -> vector<8x128xf32>
    %44 = arith.mulf %36, %43 : vector<8x128xf32>
    %45 = arith.maximumf %5, %13 : vector<8x128xf32>
    %46 = arith.minimumf %1, %9 : vector<8x128xf32>
    %47 = arith.subf %45, %46 : vector<8x128xf32>
    %48 = arith.maximumf %7, %15 : vector<8x128xf32>
    %49 = arith.minimumf %3, %11 : vector<8x128xf32>
    %50 = arith.subf %48, %49 : vector<8x128xf32>
    %51 = arith.mulf %47, %47 : vector<8x128xf32>
    %52 = arith.mulf %50, %50 : vector<8x128xf32>
    %53 = arith.addf %51, %52 : vector<8x128xf32>
    %cst_22 = arith.constant 1.000000e-07 : f32
    %54 = vector.broadcast %cst_22 : f32 to vector<8x128xf32>
    %55 = arith.addf %53, %54 : vector<8x128xf32>
    %56 = arith.addf %9, %13 : vector<8x128xf32>
    %57 = arith.subf %56, %1 : vector<8x128xf32>
    %58 = arith.subf %57, %5 : vector<8x128xf32>
    %59 = arith.mulf %58, %58 : vector<8x128xf32>
    %60 = arith.addf %11, %15 : vector<8x128xf32>
    %61 = arith.subf %60, %3 : vector<8x128xf32>
    %62 = arith.subf %61, %7 : vector<8x128xf32>
    %63 = arith.mulf %62, %62 : vector<8x128xf32>
    %64 = arith.addf %59, %63 : vector<8x128xf32>
    %cst_23 = arith.constant 2.500000e-01 : f32
    %65 = vector.broadcast %cst_23 : f32 to vector<8x128xf32>
    %66 = arith.mulf %64, %65 : vector<8x128xf32>
    %67 = tpu.reciprocal %25 {approx = true} : vector<8x128xf32> -> vector<8x128xf32>
    %68 = arith.mulf %22, %67 : vector<8x128xf32>
    %69 = math.absf %68 : vector<8x128xf32>
    %cst_24 = arith.constant 1.000000e+00 : f32
    %70 = vector.broadcast %cst_24 : f32 to vector<8x128xf32>
    %71 = arith.cmpf ogt, %69, %70 : vector<8x128xf32>
    %cst_25 = arith.constant 1.000000e-07 : f32
    %72 = vector.broadcast %cst_25 : f32 to vector<8x128xf32>
    %73 = arith.maximumf %69, %72 : vector<8x128xf32>
    %74 = tpu.reciprocal %73 {approx = true} : vector<8x128xf32> -> vector<8x128xf32>
    %75 = arith.select %71, %74, %69 : vector<8x128xi1>, vector<8x128xf32>
    %cst_26 = arith.constant 0.414213568 : f32
    %76 = vector.broadcast %cst_26 : f32 to vector<8x128xf32>
    %77 = arith.cmpf ogt, %75, %76 : vector<8x128xf32>
    %cst_27 = arith.constant 1.000000e+00 : f32
    %78 = vector.broadcast %cst_27 : f32 to vector<8x128xf32>
    %79 = arith.subf %75, %78 : vector<8x128xf32>
    %cst_28 = arith.constant 1.000000e+00 : f32
    %80 = vector.broadcast %cst_28 : f32 to vector<8x128xf32>
    %81 = arith.addf %75, %80 : vector<8x128xf32>
    %82 = tpu.reciprocal %81 {approx = true} : vector<8x128xf32> -> vector<8x128xf32>
    %83 = arith.mulf %79, %82 : vector<8x128xf32>
    %84 = arith.select %77, %83, %75 : vector<8x128xi1>, vector<8x128xf32>
    %85 = arith.mulf %84, %84 : vector<8x128xf32>
    %cst_29 = arith.constant 0.0769230798 : f32
    %86 = vector.broadcast %cst_29 : f32 to vector<8x128xf32>
    %87 = arith.mulf %85, %86 : vector<8x128xf32>
    %cst_30 = arith.constant -0.0909090936 : f32
    %88 = vector.broadcast %cst_30 : f32 to vector<8x128xf32>
    %89 = arith.addf %88, %87 : vector<8x128xf32>
    %90 = arith.mulf %85, %89 : vector<8x128xf32>
    %cst_31 = arith.constant 0.111111112 : f32
    %91 = vector.broadcast %cst_31 : f32 to vector<8x128xf32>
    %92 = arith.addf %91, %90 : vector<8x128xf32>
    %93 = arith.mulf %85, %92 : vector<8x128xf32>
    %cst_32 = arith.constant -0.142857149 : f32
    %94 = vector.broadcast %cst_32 : f32 to vector<8x128xf32>
    %95 = arith.addf %94, %93 : vector<8x128xf32>
    %96 = arith.mulf %85, %95 : vector<8x128xf32>
    %cst_33 = arith.constant 2.000000e-01 : f32
    %97 = vector.broadcast %cst_33 : f32 to vector<8x128xf32>
    %98 = arith.addf %97, %96 : vector<8x128xf32>
    %99 = arith.mulf %85, %98 : vector<8x128xf32>
    %cst_34 = arith.constant -0.333333343 : f32
    %100 = vector.broadcast %cst_34 : f32 to vector<8x128xf32>
    %101 = arith.addf %100, %99 : vector<8x128xf32>
    %102 = arith.mulf %85, %101 : vector<8x128xf32>
    %cst_35 = arith.constant 1.000000e+00 : f32
    %103 = vector.broadcast %cst_35 : f32 to vector<8x128xf32>
    %104 = arith.addf %103, %102 : vector<8x128xf32>
    %105 = arith.mulf %84, %104 : vector<8x128xf32>
    %cst_36 = arith.constant 0.785398185 : f32
    %106 = vector.broadcast %cst_36 : f32 to vector<8x128xf32>
    %107 = arith.addf %106, %105 : vector<8x128xf32>
    %108 = arith.select %77, %107, %105 : vector<8x128xi1>, vector<8x128xf32>
    %cst_37 = arith.constant 1.57079637 : f32
    %109 = vector.broadcast %cst_37 : f32 to vector<8x128xf32>
    %110 = arith.subf %109, %108 : vector<8x128xf32>
    %111 = arith.select %71, %110, %108 : vector<8x128xi1>, vector<8x128xf32>
    %cst_38 = arith.constant 0.000000e+00 : f32
    %112 = vector.broadcast %cst_38 : f32 to vector<8x128xf32>
    %113 = arith.cmpf olt, %68, %112 : vector<8x128xf32>
    %cst_39 = arith.constant 0.000000e+00 : f32
    %114 = vector.broadcast %cst_39 : f32 to vector<8x128xf32>
    %115 = arith.subf %114, %111 : vector<8x128xf32>
    %116 = arith.select %113, %115, %111 : vector<8x128xi1>, vector<8x128xf32>
    %117 = tpu.reciprocal %21 {approx = true} : vector<8x128xf32> -> vector<8x128xf32>
    %118 = arith.mulf %18, %117 : vector<8x128xf32>
    %119 = math.absf %118 : vector<8x128xf32>
    %cst_40 = arith.constant 1.000000e+00 : f32
    %120 = vector.broadcast %cst_40 : f32 to vector<8x128xf32>
    %121 = arith.cmpf ogt, %119, %120 : vector<8x128xf32>
    %cst_41 = arith.constant 1.000000e-07 : f32
    %122 = vector.broadcast %cst_41 : f32 to vector<8x128xf32>
    %123 = arith.maximumf %119, %122 : vector<8x128xf32>
    %124 = tpu.reciprocal %123 {approx = true} : vector<8x128xf32> -> vector<8x128xf32>
    %125 = arith.select %121, %124, %119 : vector<8x128xi1>, vector<8x128xf32>
    %cst_42 = arith.constant 0.414213568 : f32
    %126 = vector.broadcast %cst_42 : f32 to vector<8x128xf32>
    %127 = arith.cmpf ogt, %125, %126 : vector<8x128xf32>
    %cst_43 = arith.constant 1.000000e+00 : f32
    %128 = vector.broadcast %cst_43 : f32 to vector<8x128xf32>
    %129 = arith.subf %125, %128 : vector<8x128xf32>
    %cst_44 = arith.constant 1.000000e+00 : f32
    %130 = vector.broadcast %cst_44 : f32 to vector<8x128xf32>
    %131 = arith.addf %125, %130 : vector<8x128xf32>
    %132 = tpu.reciprocal %131 {approx = true} : vector<8x128xf32> -> vector<8x128xf32>
    %133 = arith.mulf %129, %132 : vector<8x128xf32>
    %134 = arith.select %127, %133, %125 : vector<8x128xi1>, vector<8x128xf32>
    %135 = arith.mulf %134, %134 : vector<8x128xf32>
    %cst_45 = arith.constant 0.0769230798 : f32
    %136 = vector.broadcast %cst_45 : f32 to vector<8x128xf32>
    %137 = arith.mulf %135, %136 : vector<8x128xf32>
    %cst_46 = arith.constant -0.0909090936 : f32
    %138 = vector.broadcast %cst_46 : f32 to vector<8x128xf32>
    %139 = arith.addf %138, %137 : vector<8x128xf32>
    %140 = arith.mulf %135, %139 : vector<8x128xf32>
    %cst_47 = arith.constant 0.111111112 : f32
    %141 = vector.broadcast %cst_47 : f32 to vector<8x128xf32>
    %142 = arith.addf %141, %140 : vector<8x128xf32>
    %143 = arith.mulf %135, %142 : vector<8x128xf32>
    %cst_48 = arith.constant -0.142857149 : f32
    %144 = vector.broadcast %cst_48 : f32 to vector<8x128xf32>
    %145 = arith.addf %144, %143 : vector<8x128xf32>
    %146 = arith.mulf %135, %145 : vector<8x128xf32>
    %cst_49 = arith.constant 2.000000e-01 : f32
    %147 = vector.broadcast %cst_49 : f32 to vector<8x128xf32>
    %148 = arith.addf %147, %146 : vector<8x128xf32>
    %149 = arith.mulf %135, %148 : vector<8x128xf32>
    %cst_50 = arith.constant -0.333333343 : f32
    %150 = vector.broadcast %cst_50 : f32 to vector<8x128xf32>
    %151 = arith.addf %150, %149 : vector<8x128xf32>
    %152 = arith.mulf %135, %151 : vector<8x128xf32>
    %cst_51 = arith.constant 1.000000e+00 : f32
    %153 = vector.broadcast %cst_51 : f32 to vector<8x128xf32>
    %154 = arith.addf %153, %152 : vector<8x128xf32>
    %155 = arith.mulf %134, %154 : vector<8x128xf32>
    %cst_52 = arith.constant 0.785398185 : f32
    %156 = vector.broadcast %cst_52 : f32 to vector<8x128xf32>
    %157 = arith.addf %156, %155 : vector<8x128xf32>
    %158 = arith.select %127, %157, %155 : vector<8x128xi1>, vector<8x128xf32>
    %cst_53 = arith.constant 1.57079637 : f32
    %159 = vector.broadcast %cst_53 : f32 to vector<8x128xf32>
    %160 = arith.subf %159, %158 : vector<8x128xf32>
    %161 = arith.select %121, %160, %158 : vector<8x128xi1>, vector<8x128xf32>
    %cst_54 = arith.constant 0.000000e+00 : f32
    %162 = vector.broadcast %cst_54 : f32 to vector<8x128xf32>
    %163 = arith.cmpf olt, %118, %162 : vector<8x128xf32>
    %cst_55 = arith.constant 0.000000e+00 : f32
    %164 = vector.broadcast %cst_55 : f32 to vector<8x128xf32>
    %165 = arith.subf %164, %161 : vector<8x128xf32>
    %166 = arith.select %163, %165, %161 : vector<8x128xi1>, vector<8x128xf32>
    %167 = arith.subf %116, %166 : vector<8x128xf32>
    %cst_56 = arith.constant 0.405284733 : f32
    %168 = vector.broadcast %cst_56 : f32 to vector<8x128xf32>
    %169 = arith.mulf %168, %167 : vector<8x128xf32>
    %170 = arith.mulf %169, %167 : vector<8x128xf32>
    %171 = arith.subf %170, %44 : vector<8x128xf32>
    %cst_57 = arith.constant 1.00000012 : f32
    %172 = vector.broadcast %cst_57 : f32 to vector<8x128xf32>
    %173 = arith.addf %171, %172 : vector<8x128xf32>
    %174 = tpu.reciprocal %173 {approx = true} : vector<8x128xf32> -> vector<8x128xf32>
    %175 = arith.mulf %170, %174 : vector<8x128xf32>
    %176 = tpu.reciprocal %55 {approx = true} : vector<8x128xf32> -> vector<8x128xf32>
    %177 = arith.mulf %66, %176 : vector<8x128xf32>
    %178 = arith.mulf %170, %175 : vector<8x128xf32>
    %179 = arith.addf %177, %178 : vector<8x128xf32>
    %180 = arith.subf %44, %179 : vector<8x128xf32>
    %cst_58 = arith.constant 1.000000e+00 : f32
    %181 = vector.broadcast %cst_58 : f32 to vector<8x128xf32>
    %182 = arith.subf %181, %180 : vector<8x128xf32>
    %183 = arith.mulf %182, %17 : vector<8x128xf32>
    %c0_59 = arith.constant 0 : index
    %c0_60 = arith.constant 0 : index
    %c0_61 = arith.constant 0 : index
    %c0_62 = arith.constant 0 : index
    %184 = vector.load %arg3[%c0_59, %c0_60, %c0_61, %c0_62] : memref<1x2x8x128xf32, #tpu.memory_space<vmem>>, vector<1x1x8x128xf32>
    %185 = vector.shape_cast %184 : vector<1x1x8x128xf32> to vector<8x128xf32>
    %186 = vector.shape_cast %183 : vector<8x128xf32> to vector<1x1x8x128xf32>
    tpu.vector_store %arg3[%c0_59, %c0_60, %c0_61, %c0_62], %186 {strides = array<i32>} : memref<1x2x8x128xf32, #tpu.memory_space<vmem>>, vector<1x1x8x128xf32>,
    %c8 = arith.constant 8 : index
    %c0_63 = arith.constant 0 : index
    %c0_64 = arith.constant 0 : index
    %187 = vector.load %arg1[%c8, %c0_63, %c0_64] : memref<11x8x128xf32, #tpu.memory_space<vmem>>, vector<1x8x128xf32>
    %188 = vector.shape_cast %187 : vector<1x8x128xf32> to vector<8x128xf32>
    %c9 = arith.constant 9 : index
    %c0_65 = arith.constant 0 : index
    %c0_66 = arith.constant 0 : index
    %189 = vector.load %arg1[%c9, %c0_65, %c0_66] : memref<11x8x128xf32, #tpu.memory_space<vmem>>, vector<1x8x128xf32>
    %190 = vector.shape_cast %189 : vector<1x8x128xf32> to vector<8x128xf32>
    %191 = arith.subf %188, %9 : vector<8x128xf32>
    %cst_67 = arith.constant 0.000000e+00 : f32
    %cst_68 = arith.constant 1.599000e+01 : f32
    %192 = vector.broadcast %cst_67 : f32 to vector<8x128xf32>
    %193 = arith.maximumf %192, %191 : vector<8x128xf32>
    %194 = vector.broadcast %cst_68 : f32 to vector<8x128xf32>
    %195 = arith.minimumf %194, %193 : vector<8x128xf32>
    %196 = arith.subf %190, %11 : vector<8x128xf32>
    %cst_69 = arith.constant 0.000000e+00 : f32
    %cst_70 = arith.constant 1.599000e+01 : f32
    %197 = vector.broadcast %cst_69 : f32 to vector<8x128xf32>
    %198 = arith.maximumf %197, %196 : vector<8x128xf32>
    %199 = vector.broadcast %cst_70 : f32 to vector<8x128xf32>
    %200 = arith.minimumf %199, %198 : vector<8x128xf32>
    %201 = arith.subf %13, %188 : vector<8x128xf32>
    %cst_71 = arith.constant 0.000000e+00 : f32
    %cst_72 = arith.constant 1.599000e+01 : f32
    %202 = vector.broadcast %cst_71 : f32 to vector<8x128xf32>
    %203 = arith.maximumf %202, %201 : vector<8x128xf32>
    %204 = vector.broadcast %cst_72 : f32 to vector<8x128xf32>
    %205 = arith.minimumf %204, %203 : vector<8x128xf32>
    %206 = arith.subf %15, %190 : vector<8x128xf32>
    %cst_73 = arith.constant 0.000000e+00 : f32
    %cst_74 = arith.constant 1.599000e+01 : f32
    %207 = vector.broadcast %cst_73 : f32 to vector<8x128xf32>
    %208 = arith.maximumf %207, %206 : vector<8x128xf32>
    %209 = vector.broadcast %cst_74 : f32 to vector<8x128xf32>
    %210 = arith.minimumf %209, %208 : vector<8x128xf32>
    %211 = tpu.iota {dimensions = array<i32: 0>} : vector<17x8x128xi32>
    %212 = math.floor %195 : vector<8x128xf32>
    %213 = arith.fptosi %212 : vector<8x128xf32> to vector<8x128xi32>
    %cst_75 = arith.constant 1.000000e+00 : f32
    %214 = vector.broadcast %cst_75 : f32 to vector<8x128xf32>
    %215 = arith.addf %212, %214 : vector<8x128xf32>
    %216 = arith.subf %215, %195 : vector<8x128xf32>
    %cst_76 = arith.constant 1.000000e+00 : f32
    %217 = vector.broadcast %cst_76 : f32 to vector<8x128xf32>
    %218 = arith.subf %217, %216 : vector<8x128xf32>
    %c0_77 = arith.constant 0 : index
    %c0_78 = arith.constant 0 : index
    %c0_79 = arith.constant 0 : index
    %c0_80 = arith.constant 0 : index
    %219 = vector.load %arg2[%c0_77, %c0_78, %c0_79, %c0_80] : memref<4x17x8x128xf32, #tpu.memory_space<vmem>>, vector<1x17x8x128xf32>
    %220 = vector.shape_cast %219 : vector<1x17x8x128xf32> to vector<17x8x128xf32>
    %cst_81 = arith.constant dense<0xFF800000> : vector<8x128xf32>
    %221 = vector.multi_reduction <maximumf>, %220, %cst_81 [0] : vector<17x8x128xf32> to vector<8x128xf32>
    %222 = vector.shape_cast %221 : vector<8x128xf32> to vector<1x8x128xf32>
    %223 = vector.broadcast %222 : vector<1x8x128xf32> to vector<17x8x128xf32>
    %224 = arith.subf %220, %223 : vector<17x8x128xf32>
    %225 = math.exp %224 : vector<17x8x128xf32>
    %cst_82 = arith.constant dense<0.000000e+00> : vector<8x128xf32>
    %226 = vector.multi_reduction <add>, %225, %cst_82 [0] : vector<17x8x128xf32> to vector<8x128xf32>
    %227 = math.log %226 : vector<8x128xf32>
    %228 = arith.addf %221, %227 : vector<8x128xf32>
    %229 = vector.shape_cast %213 : vector<8x128xi32> to vector<1x8x128xi32>
    %230 = vector.broadcast %229 : vector<1x8x128xi32> to vector<17x8x128xi32>
    %231 = arith.cmpi eq, %211, %230 : vector<17x8x128xi32>
    %232 = vector.shape_cast %216 : vector<8x128xf32> to vector<1x8x128xf32>
    %cst_83 = arith.constant 0.000000e+00 : f32
    %233 = vector.shape_cast %232 : vector<1x8x128xf32> to vector<1x8x128xf32>
    %234 = vector.broadcast %233 : vector<1x8x128xf32> to vector<17x8x128xf32>
    %235 = vector.broadcast %cst_83 : f32 to vector<17x8x128xf32>
    %236 = arith.select %231, %234, %235 : vector<17x8x128xi1>, vector<17x8x128xf32>
    %237 = vector.shape_cast %213 : vector<8x128xi32> to vector<1x8x128xi32>
    %c1_i32 = arith.constant 1 : i32
    %238 = vector.broadcast %c1_i32 : i32 to vector<1x8x128xi32>
    %239 = arith.addi %237, %238 : vector<1x8x128xi32>
    %240 = vector.broadcast %239 : vector<1x8x128xi32> to vector<17x8x128xi32>
    %241 = arith.cmpi eq, %211, %240 : vector<17x8x128xi32>
    %242 = vector.shape_cast %218 : vector<8x128xf32> to vector<1x8x128xf32>
    %cst_84 = arith.constant 0.000000e+00 : f32
    %243 = vector.shape_cast %242 : vector<1x8x128xf32> to vector<1x8x128xf32>
    %244 = vector.broadcast %243 : vector<1x8x128xf32> to vector<17x8x128xf32>
    %245 = vector.broadcast %cst_84 : f32 to vector<17x8x128xf32>
    %246 = arith.select %241, %244, %245 : vector<17x8x128xi1>, vector<17x8x128xf32>
    %247 = arith.addf %236, %246 : vector<17x8x128xf32>
    %248 = arith.mulf %247, %220 : vector<17x8x128xf32>
    %cst_85 = arith.constant dense<0.000000e+00> : vector<8x128xf32>
    %249 = vector.multi_reduction <add>, %248, %cst_85 [0] : vector<17x8x128xf32> to vector<8x128xf32>
    %250 = arith.subf %228, %249 : vector<8x128xf32>
    %251 = math.floor %200 : vector<8x128xf32>
    %252 = arith.fptosi %251 : vector<8x128xf32> to vector<8x128xi32>
    %cst_86 = arith.constant 1.000000e+00 : f32
    %253 = vector.broadcast %cst_86 : f32 to vector<8x128xf32>
    %254 = arith.addf %251, %253 : vector<8x128xf32>
    %255 = arith.subf %254, %200 : vector<8x128xf32>
    %cst_87 = arith.constant 1.000000e+00 : f32
    %256 = vector.broadcast %cst_87 : f32 to vector<8x128xf32>
    %257 = arith.subf %256, %255 : vector<8x128xf32>
    %c1_88 = arith.constant 1 : index
    %c0_89 = arith.constant 0 : index
    %c0_90 = arith.constant 0 : index
    %c0_91 = arith.constant 0 : index
    %258 = vector.load %arg2[%c1_88, %c0_89, %c0_90, %c0_91] : memref<4x17x8x128xf32, #tpu.memory_space<vmem>>, vector<1x17x8x128xf32>
    %259 = vector.shape_cast %258 : vector<1x17x8x128xf32> to vector<17x8x128xf32>
    %cst_92 = arith.constant dense<0xFF800000> : vector<8x128xf32>
    %260 = vector.multi_reduction <maximumf>, %259, %cst_92 [0] : vector<17x8x128xf32> to vector<8x128xf32>
    %261 = vector.shape_cast %260 : vector<8x128xf32> to vector<1x8x128xf32>
    %262 = vector.broadcast %261 : vector<1x8x128xf32> to vector<17x8x128xf32>
    %263 = arith.subf %259, %262 : vector<17x8x128xf32>
    %264 = math.exp %263 : vector<17x8x128xf32>
    %cst_93 = arith.constant dense<0.000000e+00> : vector<8x128xf32>
    %265 = vector.multi_reduction <add>, %264, %cst_93 [0] : vector<17x8x128xf32> to vector<8x128xf32>
    %266 = math.log %265 : vector<8x128xf32>
    %267 = arith.addf %260, %266 : vector<8x128xf32>
    %268 = vector.shape_cast %252 : vector<8x128xi32> to vector<1x8x128xi32>
    %269 = vector.broadcast %268 : vector<1x8x128xi32> to vector<17x8x128xi32>
    %270 = arith.cmpi eq, %211, %269 : vector<17x8x128xi32>
    %271 = vector.shape_cast %255 : vector<8x128xf32> to vector<1x8x128xf32>
    %cst_94 = arith.constant 0.000000e+00 : f32
    %272 = vector.shape_cast %271 : vector<1x8x128xf32> to vector<1x8x128xf32>
    %273 = vector.broadcast %272 : vector<1x8x128xf32> to vector<17x8x128xf32>
    %274 = vector.broadcast %cst_94 : f32 to vector<17x8x128xf32>
    %275 = arith.select %270, %273, %274 : vector<17x8x128xi1>, vector<17x8x128xf32>
    %276 = vector.shape_cast %252 : vector<8x128xi32> to vector<1x8x128xi32>
    %c1_i32_95 = arith.constant 1 : i32
    %277 = vector.broadcast %c1_i32_95 : i32 to vector<1x8x128xi32>
    %278 = arith.addi %276, %277 : vector<1x8x128xi32>
    %279 = vector.broadcast %278 : vector<1x8x128xi32> to vector<17x8x128xi32>
    %280 = arith.cmpi eq, %211, %279 : vector<17x8x128xi32>
    %281 = vector.shape_cast %257 : vector<8x128xf32> to vector<1x8x128xf32>
    %cst_96 = arith.constant 0.000000e+00 : f32
    %282 = vector.shape_cast %281 : vector<1x8x128xf32> to vector<1x8x128xf32>
    %283 = vector.broadcast %282 : vector<1x8x128xf32> to vector<17x8x128xf32>
    %284 = vector.broadcast %cst_96 : f32 to vector<17x8x128xf32>
    %285 = arith.select %280, %283, %284 : vector<17x8x128xi1>, vector<17x8x128xf32>
    %286 = arith.addf %275, %285 : vector<17x8x128xf32>
    %287 = arith.mulf %286, %259 : vector<17x8x128xf32>
    %cst_97 = arith.constant dense<0.000000e+00> : vector<8x128xf32>
    %288 = vector.multi_reduction <add>, %287, %cst_97 [0] : vector<17x8x128xf32> to vector<8x128xf32>
    %289 = arith.subf %267, %288 : vector<8x128xf32>
    %290 = arith.addf %250, %289 : vector<8x128xf32>
    %291 = math.floor %205 : vector<8x128xf32>
    %292 = arith.fptosi %291 : vector<8x128xf32> to vector<8x128xi32>
    %cst_98 = arith.constant 1.000000e+00 : f32
    %293 = vector.broadcast %cst_98 : f32 to vector<8x128xf32>
    %294 = arith.addf %291, %293 : vector<8x128xf32>
    %295 = arith.subf %294, %205 : vector<8x128xf32>
    %cst_99 = arith.constant 1.000000e+00 : f32
    %296 = vector.broadcast %cst_99 : f32 to vector<8x128xf32>
    %297 = arith.subf %296, %295 : vector<8x128xf32>
    %c2_100 = arith.constant 2 : index
    %c0_101 = arith.constant 0 : index
    %c0_102 = arith.constant 0 : index
    %c0_103 = arith.constant 0 : index
    %298 = vector.load %arg2[%c2_100, %c0_101, %c0_102, %c0_103] : memref<4x17x8x128xf32, #tpu.memory_space<vmem>>, vector<1x17x8x128xf32>
    %299 = vector.shape_cast %298 : vector<1x17x8x128xf32> to vector<17x8x128xf32>
    %cst_104 = arith.constant dense<0xFF800000> : vector<8x128xf32>
    %300 = vector.multi_reduction <maximumf>, %299, %cst_104 [0] : vector<17x8x128xf32> to vector<8x128xf32>
    %301 = vector.shape_cast %300 : vector<8x128xf32> to vector<1x8x128xf32>
    %302 = vector.broadcast %301 : vector<1x8x128xf32> to vector<17x8x128xf32>
    %303 = arith.subf %299, %302 : vector<17x8x128xf32>
    %304 = math.exp %303 : vector<17x8x128xf32>
    %cst_105 = arith.constant dense<0.000000e+00> : vector<8x128xf32>
    %305 = vector.multi_reduction <add>, %304, %cst_105 [0] : vector<17x8x128xf32> to vector<8x128xf32>
    %306 = math.log %305 : vector<8x128xf32>
    %307 = arith.addf %300, %306 : vector<8x128xf32>
    %308 = vector.shape_cast %292 : vector<8x128xi32> to vector<1x8x128xi32>
    %309 = vector.broadcast %308 : vector<1x8x128xi32> to vector<17x8x128xi32>
    %310 = arith.cmpi eq, %211, %309 : vector<17x8x128xi32>
    %311 = vector.shape_cast %295 : vector<8x128xf32> to vector<1x8x128xf32>
    %cst_106 = arith.constant 0.000000e+00 : f32
    %312 = vector.shape_cast %311 : vector<1x8x128xf32> to vector<1x8x128xf32>
    %313 = vector.broadcast %312 : vector<1x8x128xf32> to vector<17x8x128xf32>
    %314 = vector.broadcast %cst_106 : f32 to vector<17x8x128xf32>
    %315 = arith.select %310, %313, %314 : vector<17x8x128xi1>, vector<17x8x128xf32>
    %316 = vector.shape_cast %292 : vector<8x128xi32> to vector<1x8x128xi32>
    %c1_i32_107 = arith.constant 1 : i32
    %317 = vector.broadcast %c1_i32_107 : i32 to vector<1x8x128xi32>
    %318 = arith.addi %316, %317 : vector<1x8x128xi32>
    %319 = vector.broadcast %318 : vector<1x8x128xi32> to vector<17x8x128xi32>
    %320 = arith.cmpi eq, %211, %319 : vector<17x8x128xi32>
    %321 = vector.shape_cast %297 : vector<8x128xf32> to vector<1x8x128xf32>
    %cst_108 = arith.constant 0.000000e+00 : f32
    %322 = vector.shape_cast %321 : vector<1x8x128xf32> to vector<1x8x128xf32>
    %323 = vector.broadcast %322 : vector<1x8x128xf32> to vector<17x8x128xf32>
    %324 = vector.broadcast %cst_108 : f32 to vector<17x8x128xf32>
    %325 = arith.select %320, %323, %324 : vector<17x8x128xi1>, vector<17x8x128xf32>
    %326 = arith.addf %315, %325 : vector<17x8x128xf32>
    %327 = arith.mulf %326, %299 : vector<17x8x128xf32>
    %cst_109 = arith.constant dense<0.000000e+00> : vector<8x128xf32>
    %328 = vector.multi_reduction <add>, %327, %cst_109 [0] : vector<17x8x128xf32> to vector<8x128xf32>
    %329 = arith.subf %307, %328 : vector<8x128xf32>
    %330 = arith.addf %290, %329 : vector<8x128xf32>
    %331 = math.floor %210 : vector<8x128xf32>
    %332 = arith.fptosi %331 : vector<8x128xf32> to vector<8x128xi32>
    %cst_110 = arith.constant 1.000000e+00 : f32
    %333 = vector.broadcast %cst_110 : f32 to vector<8x128xf32>
    %334 = arith.addf %331, %333 : vector<8x128xf32>
    %335 = arith.subf %334, %210 : vector<8x128xf32>
    %cst_111 = arith.constant 1.000000e+00 : f32
    %336 = vector.broadcast %cst_111 : f32 to vector<8x128xf32>
    %337 = arith.subf %336, %335 : vector<8x128xf32>
    %c3_112 = arith.constant 3 : index
    %c0_113 = arith.constant 0 : index
    %c0_114 = arith.constant 0 : index
    %c0_115 = arith.constant 0 : index
    %338 = vector.load %arg2[%c3_112, %c0_113, %c0_114, %c0_115] : memref<4x17x8x128xf32, #tpu.memory_space<vmem>>, vector<1x17x8x128xf32>
    %339 = vector.shape_cast %338 : vector<1x17x8x128xf32> to vector<17x8x128xf32>
    %cst_116 = arith.constant dense<0xFF800000> : vector<8x128xf32>
    %340 = vector.multi_reduction <maximumf>, %339, %cst_116 [0] : vector<17x8x128xf32> to vector<8x128xf32>
    %341 = vector.shape_cast %340 : vector<8x128xf32> to vector<1x8x128xf32>
    %342 = vector.broadcast %341 : vector<1x8x128xf32> to vector<17x8x128xf32>
    %343 = arith.subf %339, %342 : vector<17x8x128xf32>
    %344 = math.exp %343 : vector<17x8x128xf32>
    %cst_117 = arith.constant dense<0.000000e+00> : vector<8x128xf32>
    %345 = vector.multi_reduction <add>, %344, %cst_117 [0] : vector<17x8x128xf32> to vector<8x128xf32>
    %346 = math.log %345 : vector<8x128xf32>
    %347 = arith.addf %340, %346 : vector<8x128xf32>
    %348 = vector.shape_cast %332 : vector<8x128xi32> to vector<1x8x128xi32>
    %349 = vector.broadcast %348 : vector<1x8x128xi32> to vector<17x8x128xi32>
    %350 = arith.cmpi eq, %211, %349 : vector<17x8x128xi32>
    %351 = vector.shape_cast %335 : vector<8x128xf32> to vector<1x8x128xf32>
    %cst_118 = arith.constant 0.000000e+00 : f32
    %352 = vector.shape_cast %351 : vector<1x8x128xf32> to vector<1x8x128xf32>
    %353 = vector.broadcast %352 : vector<1x8x128xf32> to vector<17x8x128xf32>
    %354 = vector.broadcast %cst_118 : f32 to vector<17x8x128xf32>
    %355 = arith.select %350, %353, %354 : vector<17x8x128xi1>, vector<17x8x128xf32>
    %356 = vector.shape_cast %332 : vector<8x128xi32> to vector<1x8x128xi32>
    %c1_i32_119 = arith.constant 1 : i32
    %357 = vector.broadcast %c1_i32_119 : i32 to vector<1x8x128xi32>
    %358 = arith.addi %356, %357 : vector<1x8x128xi32>
    %359 = vector.broadcast %358 : vector<1x8x128xi32> to vector<17x8x128xi32>
    %360 = arith.cmpi eq, %211, %359 : vector<17x8x128xi32>
    %361 = vector.shape_cast %337 : vector<8x128xf32> to vector<1x8x128xf32>
    %cst_120 = arith.constant 0.000000e+00 : f32
    %362 = vector.shape_cast %361 : vector<1x8x128xf32> to vector<1x8x128xf32>
    %363 = vector.broadcast %362 : vector<1x8x128xf32> to vector<17x8x128xf32>
    %364 = vector.broadcast %cst_120 : f32 to vector<17x8x128xf32>
    %365 = arith.select %360, %363, %364 : vector<17x8x128xi1>, vector<17x8x128xf32>
    %366 = arith.addf %355, %365 : vector<17x8x128xf32>
    %367 = arith.mulf %366, %339 : vector<17x8x128xf32>
    %cst_121 = arith.constant dense<0.000000e+00> : vector<8x128xf32>
    %368 = vector.multi_reduction <add>, %367, %cst_121 [0] : vector<17x8x128xf32> to vector<8x128xf32>
    %369 = arith.subf %347, %368 : vector<8x128xf32>
    %370 = arith.addf %330, %369 : vector<8x128xf32>
    %cst_122 = arith.constant 2.500000e-01 : f32
    %371 = vector.broadcast %cst_122 : f32 to vector<8x128xf32>
    %372 = arith.mulf %370, %371 : vector<8x128xf32>
    %373 = arith.mulf %372, %17 : vector<8x128xf32>
    %c0_123 = arith.constant 0 : index
    %c1_124 = arith.constant 1 : index
    %c0_125 = arith.constant 0 : index
    %c0_126 = arith.constant 0 : index
    %374 = vector.load %arg3[%c0_123, %c1_124, %c0_125, %c0_126] : memref<1x2x8x128xf32, #tpu.memory_space<vmem>>, vector<1x1x8x128xf32>
    %375 = vector.shape_cast %374 : vector<1x1x8x128xf32> to vector<8x128xf32>
    %376 = vector.shape_cast %373 : vector<8x128xf32> to vector<1x1x8x128xf32>
    tpu.vector_store %arg3[%c0_123, %c1_124, %c0_125, %c0_126], %376 {strides = array<i32>} : memref<1x2x8x128xf32, #tpu.memory_space<vmem>>, vector<1x1x8x128xf32>,
    return
  }
  func.func @transform_0(%arg0: i32) -> (i32, i32, i32) {
    %c0_i32 = arith.constant 0 : i32
    %c0_i32_0 = arith.constant 0 : i32
    %c0_i32_1 = arith.constant 0 : i32
    return %c0_i32, %arg0, %c0_i32_0 : i32, i32, i32
  }
  func.func @transform_1(%arg0: i32) -> (i32, i32, i32, i32) {
    %c0_i32 = arith.constant 0 : i32
    %c0_i32_0 = arith.constant 0 : i32
    %c0_i32_1 = arith.constant 0 : i32
    %c0_i32_2 = arith.constant 0 : i32
    return %c0_i32, %c0_i32_0, %arg0, %c0_i32_1 : i32, i32, i32, i32
  }
  func.func @transform_2(%arg0: i32) -> (i32, i32, i32, i32) {
    %c0_i32 = arith.constant 0 : i32
    %c0_i32_0 = arith.constant 0 : i32
    %c0_i32_1 = arith.constant 0 : i32
    %c0_i32_2 = arith.constant 0 : i32
    return %arg0, %c0_i32, %c0_i32_0, %c0_i32_1 : i32, i32, i32, i32
  }
}

</mosaic_0001>

<bundles_post_ra>
// kernel: bbox_loss.1
= control target key start
LH: loop header
LB: loop body
LE: loop exit
PB: predicated region body
PF: predicated region fallthrough
CT: control target
= control target key end

     0   :  { %s2862_s0 = inlined_call_operand.vmem [shape: f32[11,8,128], index: 0, kind: input, shape index: {}]   ;;  %s2863_s1 = inlined_call_operand.vmem [shape: f32[4,17,8,128], index: 1, kind: input, shape index: {}]   ;;  %s2864_s2 = inlined_call_operand.vmem [shape: f32[1,2,8,128], index: 2, kind: output, shape index: {}]  }
   0x1   :  { %v11_v0 = vld [vmem:[%s2862_s0] sm:$0xff]  ;;  %v1095_v1 = vld [vmem:[%s2862_s0 + $0x8] sm:$0xff]  ;;  %v1096_v2 = vld [vmem:[%s2862_s0 + $0x10] sm:$0xff] }
   0x2   :  { %v1097_v3 = vld [vmem:[%s2862_s0 + $0x18] sm:$0xff]  ;;  %v1360_v4 = vld [vmem:[%s2862_s0 + $0x20] sm:$0xff]  ;;  %v1365_v5 = vld [vmem:[%s2862_s0 + $0x28] sm:$0xff]  ;;  %v1367_v6 = vsub.f32 %v1096_v2, %v11_v0 }
   0x3   :  { %v1372_v7 = vld [vmem:[%s2862_s0 + $0x30] sm:$0xff]  ;;  %v1377_v8 = vld [vmem:[%s2862_s0 + $0x38] sm:$0xff]  ;;  %v29_v9 = vsub.f32 %v1097_v3, %v1095_v1  ;;  %v35_v10 = vmax.f32 %v11_v0, %v1360_v4  ;;  %v39_v11 = vmax.f32 %v1095_v1, %v1365_v5  ;;  %v51_v12 = vmin.f32 %v11_v0, %v1360_v4  ;;  %v1402_v33 = vld [vmem:[%s2862_s0 + $0x40] sm:$0xff] }
   0x4   :  { %2888 = vst [vmem:[#allocation2_spill] sm:$0xff] %v1372_v7  ;;  %2889 = vst [vmem:[#allocation3_spill] sm:$0xff] %v1377_v8  ;;  %v1384_v13 = vsub.f32 %v1372_v7, %v1360_v4  ;;  %v32_v14 = vsub.f32 %v1377_v8, %v1365_v5  ;;  %v34_v15 = vmin.f32 %v1096_v2, %v1372_v7  ;;  %v1407_v34 = vld [vmem:[%s2862_s0 + $0x48] sm:$0xff]  ;;  %v1418_v45 = vld [vmem:[%s2863_s1] sm:$0xff] }
   0x5   :  { %v38_v16 = vmin.f32 %v1097_v3, %v1377_v8  ;;  %v30_v17 = vadd.f32 1e-07, %v29_v9  ;;  %v50_v18 = vmax.f32 %v1096_v2, %v1372_v7  ;;  %v53_v19 = vmax.f32 %v1097_v3, %v1377_v8  ;;  %2890 = vst [vmem:[#allocation4_spill] sm:$0xff] %v1402_v33  ;;  %2891 = vst [vmem:[#allocation5_spill] sm:$0xff] %v1407_v34  ;;  %v1423_v46 = vld [vmem:[%s2863_s1 + $0x20] sm:$0xff]  ;;  %v1433_v53 = vld [vmem:[%s2863_s1 + $0x8] sm:$0xff] }
   0x6   :  { %v54_v20 = vmin.f32 %v1095_v1, %v1365_v5  ;;  %v33_v21 = vadd.f32 1e-07, %v32_v14  ;;  %v36_v22 = vsub.f32 %v34_v15, %v35_v10  ;;  %v60_v24 = vadd.f32 %v1372_v7, %v1360_v4  ;;  %v1438_v54 = vld [vmem:[%s2863_s1 + $0x10] sm:$0xff]  ;;  %v1443_v55 = vld [vmem:[%s2863_s1 + $0x28] sm:$0xff]  ;;  %v1448_v57 = vld [vmem:[%s2863_s1 + $0x18] sm:$0xff] }
   0x7   :  { %v40_v23 = vsub.f32 %v38_v16, %v39_v11  ;;  %v43_v25 = vmul.f32 %v30_v17, %v1367_v6  ;;  %v52_v26 = vsub.f32 %v50_v18, %v51_v12  ;;  %v64_v28 = vadd.f32 %v1377_v8, %v1365_v5  ;;  %v1453_v58 = vld [vmem:[%s2863_s1 + $0x30] sm:$0xff]  ;;  %v1458_v59 = vld [vmem:[%s2863_s1 + $0x38] sm:$0xff]  ;;  %v1465_v62 = vld [vmem:[%s2863_s1 + $0x40] sm:$0xff] }
   0x8   :  { %v55_v27 = vsub.f32 %v53_v19, %v54_v20  ;;  %v37_v29 = vmax.f32 %v36_v22, 0.0  ;;  %v44_v31 = vmul.f32 %v33_v21, %v1384_v13  ;;  %v61_v32 = vsub.f32 %v60_v24, %v11_v0  ;;  %v1470_v63 = vld [vmem:[%s2863_s1 + $0x48] sm:$0xff]  ;;  %v1475_v0 = vld [vmem:[%s2863_s1 + $0x50] sm:$0xff]  ;;  %v1508_v16 = vld [vmem:[%s2863_s1 + $0x78] sm:$0xff] }
   0x9   :  { %v41_v30 = vmax.f32 %v40_v23, 0.0  ;;  %v56_v35 = vmul.f32 %v52_v26, %v52_v26  ;;  %v65_v37 = vsub.f32 %v64_v28, %v1095_v1  ;;  %1167 = vrcp.f32 %v33_v21  ;;  %2892 = vst [vmem:[#allocation6_spill] sm:$0xff] %v1470_v63  ;;  %2893 = vst [vmem:[#allocation7_spill] sm:$0xff] %v1475_v0  ;;  %v1480_v1 = vld [vmem:[%s2863_s1 + $0x58] sm:$0xff]  ;;  %v1501_v11 = vld [vmem:[%s2863_s1 + $0x70] sm:$0xff] }
   0xa   :  { %v57_v36 = vmul.f32 %v55_v27, %v55_v27  ;;  %v45_v39 = vadd.f32 %v44_v31, %v43_v25  ;;  %v62_v40 = vsub.f32 %v61_v32, %v1096_v2  ;;  %1169 = vrcp.f32 %v30_v17  ;;  %2894 = vst [vmem:[#allocation8_spill] sm:$0xff] %v1480_v1  ;;  %2897 = vst [vmem:[#allocation11_spill] sm:$0xff] %v1501_v11  ;;  %v1513_v17 = vld [vmem:[%s2863_s1 + $0x80] sm:$0xff]  ;;  %v1763_v7 = vld [vmem:[%s2863_s1 + $0xb8] sm:$0xff] }
   0xb   :  { %v1409_v38 = vmul.f32 %v41_v30, %v37_v29  ;;  %v66_v42 = vsub.f32 %v65_v37, %v1097_v3  ;;  %v157_v43 = vsub.f32 %v1402_v33, %v1360_v4  ;;  %v160_v44 = vsub.f32 %v1407_v34, %v1365_v5  ;;  %v1487_v3 = vld [vmem:[%s2863_s1 + $0x60] sm:$0xff]  ;;  %v1492_v4 = vld [vmem:[%s2863_s1 + $0x68] sm:$0xff]  ;;  %2898 = vst [vmem:[#allocation12_spill] sm:$0xff] %v1508_v16  ;;  %v1758_v33 = vld [vmem:[%s2863_s1 + $0x98] sm:$0xff] }
   0xc   :  { %v58_v41 = vadd.f32 %v57_v36, %v56_v35  ;;  %v63_v48 = vmul.f32 %v62_v40, %v62_v40  ;;  %v191_v60 = vmax.f32 %v1418_v45, %v1423_v46  ;;  %v192_v2 = vmax.f32 %v1433_v53, %v1443_v55  ;;  %2895 = vst [vmem:[#allocation9_spill] sm:$0xff] %v1487_v3 }
   0xd   :  { %v46_v47 = vsub.f32 %v45_v39, %v1409_v38  ;;  %v67_v52 = vmul.f32 %v66_v42, %v66_v42  ;;  %2896 = vst [vmem:[#allocation10_spill] sm:$0xff] %v1492_v4  ;;  %v193_v9 = vmax.f32 %v1438_v54, %v1453_v58  ;;  %v194_v10 = vmax.f32 %v1448_v57, %v1458_v59 }
   0xe   :  { %v59_v51 = vadd.f32 1e-07, %v58_v41  ;;  %v195_v12 = vmax.f32 %v191_v60, %v1465_v62  ;;  %v196_v14 = vmax.f32 %v192_v2, %v1470_v63  ;;  %v158_v31 = vmax.f32 %v157_v43, 0.0 }
   0xf   :  { %v47_v56 = vadd.f32 1e-07, %v46_v47  ;;  %v68_v61 = vadd.f32 %v67_v52, %v63_v48  ;;  %v197_v18 = vmax.f32 %v193_v9, %v1475_v0  ;;  %v198_v19 = vmax.f32 %v194_v10, %v1480_v1 }
  0x10   :  { %1171 = vrcp.f32 %v59_v51  ;;  %v199_v22 = vmax.f32 %v195_v12, %v1487_v3  ;;  %v200_v23 = vmax.f32 %v196_v14, %v1492_v4  ;;  %v159_v42 = vmin.f32 %v158_v31, 15.99  ;;  %v1584_v31 = vld [vmem:[%s2863_s1 + $0x88] sm:$0xff] }
  0x11   :  { %1173 = vrcp.f32 %v47_v56  ;;  %v201_v25 = vmax.f32 %v197_v18, %v1501_v11  ;;  %v69_v26 = vmul.f32 0.25, %v68_v61  ;;  %v202_v28 = vmax.f32 %v198_v19, %v1508_v16 }
  0x12   :  { %v203_v29 = vmax.f32 %v199_v22, %v1513_v17  ;;  %v169_v56 = vfloor.f32 %v159_v42  ;;  %v1556_v2 = vmax.f32 %v160_v44, 0.0 }
  0x13   :  { %v1168_v15 = vpop.eup %1167  ;;  %v205_v35 = vmax.f32 %v201_v25, %v202_v28 }
  0x14   :  { %v1170_v20 = vpop.eup %1169  ;;  %v1518_v21 = vmul.f32 %v1168_v15, %v1384_v13  ;;  %v204_v32 = vmax.f32 %v203_v29, %v200_v23  ;;  %2902 = vst [vmem:[#allocation16_spill] sm:$0xff] %v1556_v2  ;;  %v171_v18 = vadd.f32 1.0, %v169_v56  ;;  %v2868_v19 = vmin.f32 %v1556_v2, 15.99 }
  0x15   :  { %v1523_v24 = vmul.f32 %v1170_v20, %v1367_v6  ;;  %v1159_v25 = vtrunc.f32 %v169_v56 }
  0x16   :  { %v1527_v27 = vand.u32 2147483647, %v1518_v21  ;;  %v1538_v40 = vmax.f32 %v204_v32, %v205_v35  ;;  %v1589_v32 = vld [vmem:[%s2863_s1 + $0xa8] sm:$0xff]  ;;  %v1591_v35 = vsub.f32 %v171_v18, %v159_v42 }
  0x17   :  { %v1532_v13 = vand.u32 2147483647, %v1523_v24 }
  0x18   :  { %v74_v30 = vmax.f32 %v1527_v27, 1e-07  ;;  %2900 = vst [vmem:[#allocation14_spill] sm:$0xff] %v1538_v40  ;;  %v207_v47 = vsub.f32 %v1418_v45, %v1538_v40  ;;  %v208_v43 = vsub.f32 %v1433_v53, %v1538_v40  ;;  %v209_v48 = vsub.f32 %v1438_v54, %v1538_v40 }
  0x19   :  { %v108_v36 = vmax.f32 %v1532_v13, 1e-07  ;;  %v210_v51 = vsub.f32 %v1448_v57, %v1538_v40  ;;  %v211_v52 = vsub.f32 %v1423_v46, %v1538_v40  ;;  %vm2866_vm0 = vcmp.gt.f32.partialorder %v1527_v27, 1.0 }
  0x1a   :  { %v1172_v6 = vpop.eup %1171  ;;  %1175 = vrcp.f32 %v74_v30  ;;  %v226_v60 = vmul.f32 1.442695, %v208_v43  ;;  %v228_v61 = vmul.f32 1.442695, %v209_v48  ;;  %v212_v10 = vsub.f32 %v1443_v55, %v1538_v40 }
  0x1b   :  { %v1174_v37 = vpop.eup %1173  ;;  %v1536_v39 = vmul.f32 %v1172_v6, %v69_v26  ;;  %1177 = vrcp.f32 %v108_v36  ;;  %v230_v9 = vmul.f32 1.442695, %v210_v51  ;;  %vm2865_vm1 = vcmp.gt.f32.partialorder %v1532_v13, 1.0 }
  0x1c   :  { %v1541_v41 = vmul.f32 %v1174_v37, %v1409_v38  ;;  %v224_v38 = vmul.f32 1.442695, %v207_v47  ;;  %v213_v12 = vsub.f32 %v1453_v58, %v1538_v40  ;;  %v232_v14 = vmul.f32 1.442695, %v211_v52 }
  0x1d   :  { %2899 = vst [vmem:[#allocation13_spill] sm:$0xff] %v1536_v39  ;;  %v214_v20 = vsub.f32 %v1458_v59, %v1538_v40  ;;  %v234_v26 = vmul.f32 1.442695, %v212_v10  ;;  %v215_v29 = vsub.f32 %v1465_v62, %v1538_v40  ;;  %v216_v6 = vsub.f32 %v1470_v63, %v1538_v40 }
  0x1e   :  { %2901 = vst [vmem:[#allocation15_spill] sm:$0xff] %v1541_v41  ;;  %1179 = vpow2.f32 %v224_v38  ;;  %v236_v30 = vmul.f32 1.442695, %v213_v12  ;;  %v1595_v37 = vcvt.f32.s32 %v1159_v25  ;;  %v1599_v47 = vfloor.f32 %v2868_v19 }
  0x1f   :  { %1181 = vpow2.f32 %v226_v60  ;;  %v238_v36 = vmul.f32 1.442695, %v214_v20  ;;  %v217_v48 = vsub.f32 %v1475_v0, %v1538_v40  ;;  %v218_v42 = vsub.f32 %v1480_v1, %v1538_v40 }
  0x20   :  { %1183 = vpow2.f32 %v228_v61  ;;  %2903 = vst [vmem:[#allocation17_spill] sm:$0xff] %v1599_v47  ;;  %v240_v51 = vmul.f32 1.442695, %v215_v29  ;;  %v1608_v56 = vsub.f32 1.0, %v1591_v35  ;;  %v219_v38 = vsub.f32 %v1487_v3, %v1538_v40 }
  0x21   :  { %1185 = vpow2.f32 %v230_v9  ;;  %v220_v60 = vsub.f32 %v1492_v4, %v1538_v40  ;;  %v221_v61 = vsub.f32 %v1501_v11, %v1538_v40  ;;  %v222_v10 = vsub.f32 %v1508_v16, %v1538_v40 }
  0x22   :  { %1187 = vpow2.f32 %v232_v14  ;;  %v223_v12 = vsub.f32 %v1513_v17, %v1538_v40  ;;  %v242_v14 = vmul.f32 1.442695, %v216_v6  ;;  %vm277_vm2 = vcmp.eq.s32.totalorder %v1595_v37, 0 }
  0x23   :  { %vm278_vm3 = vcmp.eq.s32.totalorder %v1595_v37, 1  ;;  %vm279_vm4 = vcmp.eq.s32.totalorder %v1595_v37, 2  ;;  %vm280_vm5 = vcmp.eq.s32.totalorder %v1595_v37, 3  ;;  %vm281_vm6 = vcmp.eq.s32.totalorder %v1595_v37, 4 }
  0x24   :  { %v1176_v15 = vpop.eup %1175  ;;  %v246_v25 = vmul.f32 1.442695, %v218_v42  ;;  %vm282_vm7 = vcmp.eq.s32.totalorder %v1595_v37, 5  ;;  %v1628_v29 = vmul.f32 1.442695, %v220_v60  ;;  %vm283_vm10 = vcmp.eq.s32.totalorder %v1595_v37, 6 }
  0x25   :  { %v1178_v5 = vpop.eup %1177  ;;  %v1567_v44 = vsel %vm2866_vm0, %v1176_v15, %v1527_v27  ;;  %vm284_vm11 = vcmp.eq.s32.totalorder %v1595_v37, 7  ;;  %vm285_vm12 = vcmp.eq.s32.totalorder %v1595_v37, 8  ;;  %vm286_vm13 = vcmp.eq.s32.totalorder %v1595_v37, 9 }
  0x26   :  { %v79_v22 = vadd.f32 1.0, %v1567_v44  ;;  %v1576_v23 = vsel %vm2865_vm1, %v1178_v5, %v1532_v13  ;;  %v1103_v20 = vadd.f32 -1.0, %v1567_v44  ;;  %vm2867_vm8 = vcmp.gt.f32.partialorder %v1567_v44, 0.41421357 }
  0x27   :  { %v113_v28 = vadd.f32 1.0, %v1576_v23  ;;  %vm111_vm9 = vcmp.gt.f32.partialorder %v1576_v23, 0.41421357  ;;  %vm287_vm14 = vcmp.eq.s32.totalorder %v1595_v37, 10  ;;  %vm288_vm15 = vcmp.eq.s32.totalorder %v1595_v37, 11 }
  0x28   :  { %1189 = vrcp.f32 %v79_v22  ;;  %v1180_v52 = vpop.eup %1179  ;;  %v244_v22 = vmul.f32 1.442695, %v217_v48  ;;  %vm292_vm0 = vcmp.eq.s32.totalorder %v1595_v37, 15  ;;  %vm293_vm1 = vcmp.eq.s32.totalorder %v1595_v37, 16 }
  0x29   :  { %1191 = vrcp.f32 %v113_v28  ;;  %v1182_v9 = vpop.eup %1181  ;;  %v248_v28 = vmul.f32 1.442695, %v219_v38  ;;  %v1702_v19 = vsel %vm283_vm10, %v1591_v35, 0.0  ;;  %v1707_v49 = vsel %vm284_vm11, %v1591_v35, 0.0 }
  0x2a   :  { %1193 = vpow2.f32 %v234_v26  ;;  %v1184_v15 = vpop.eup %1183  ;;  %v258_v18 = vadd.f32 %v1182_v9, %v1180_v52  ;;  %v1104_v26 = vadd.f32 -1.0, %v1576_v23  ;;  %v1632_v52 = vmul.f32 1.442695, %v222_v10 }
  0x2b   :  { %1195 = vpow2.f32 %v236_v30  ;;  %v1186_v5 = vpop.eup %1185  ;;  %v1634_v9 = vmul.f32 1.442695, %v223_v12  ;;  %v1729_v8 = vsel %vm288_vm15, %v1591_v35, 0.0 }
  0x2c   :  { %1197 = vpow2.f32 %v238_v36  ;;  %v259_v30 = vadd.f32 %v1184_v15, %v258_v18  ;;  %v1188_v6 = vpop.eup %1187  ;;  %v1630_v36 = vmul.f32 1.442695, %v221_v61 }
  0x2d   :  { %1199 = vpow2.f32 %v240_v51 }
  0x2e   :  { %1201 = vpow2.f32 %v242_v14  ;;  %v260_v48 = vadd.f32 %v1186_v5, %v259_v30 }
  0x2f   :  { %1203 = vpow2.f32 %v244_v22 }
  0x30   :  { %v261_v61 = vadd.f32 %v1188_v6, %v260_v48  ;;  %1205 = vpow2.f32 %v246_v25  ;;  %v1676_v25 = vsel %vm278_vm3, %v1591_v35, 0.0  ;;  %v1682_v48 = vsel %vm279_vm4, %v1591_v35, 0.0 }
  0x31   :  { %1207 = vpow2.f32 %v248_v28  ;;  %v1712_v28 = vsel %vm285_vm12, %v1591_v35, 0.0  ;;  %vm2906_vm3 = vcmp.eq.s32.totalorder %v1595_v37, 13 }
  0x32   :  { %v1190_v50 = vpop.eup %1189  ;;  %1209 = vpow2.f32 %v1628_v29  ;;  %v1753_v2 = vsel %vm2906_vm3, %v1591_v35, 0.0  ;;  %vm101_vm3 = vcmp.lt.f32.partialorder %v1518_v21, 0.0 }
  0x33   :  { %v1192_v42 = vpop.eup %1191  ;;  %v81_v51 = vmul.f32 %v1190_v50, %v1103_v20  ;;  %2907 = vst [vmem:[#allocation19_spill] sm:$0xff] %v1753_v2  ;;  %1211 = vpow2.f32 %v1630_v36 }
  0x34   :  { %v1194_v38 = vpop.eup %1193  ;;  %v115_v60 = vmul.f32 %v1192_v42, %v1104_v26  ;;  %v1671_v26 = vsel %vm277_vm2, %v1591_v35, 0.0  ;;  %v1687_v42 = vsel %vm280_vm5, %v1591_v35, 0.0  ;;  %vm2904_vm2 = vcmp.eq.s32.totalorder %v1595_v37, 12 }
  0x35   :  { %v1196_v10 = vpop.eup %1195  ;;  %v1646_v12 = vsel %vm2867_vm8, %v81_v51, %v1567_v44  ;;  %v262_v15 = vadd.f32 %v1194_v38, %v261_v61  ;;  %vm291_vm8 = vcmp.eq.s32.totalorder %v1595_v37, 14  ;;  %v1692_v51 = vsel %vm281_vm6, %v1591_v35, 0.0 }
  0x36   :  { %v1653_v50 = vmul.f32 %v1646_v12, %v1646_v12  ;;  %v1658_v14 = vsel %vm111_vm9, %v115_v60, %v1576_v23  ;;  %v1198_v18 = vpop.eup %1197  ;;  %v1697_v61 = vsel %vm282_vm7, %v1591_v35, 0.0  ;;  %v1768_v29 = vsel %vm291_vm8, %v1591_v35, 0.0 }
  0x37   :  { %v1662_v5 = vmul.f32 %v1658_v14, %v1658_v14  ;;  %v263_v22 = vadd.f32 %v1196_v10, %v262_v15  ;;  %v1200_v30 = vpop.eup %1199  ;;  %2908 = vst [vmem:[#allocation20_spill] sm:$0xff] %v1768_v29  ;;  %1213 = vpow2.f32 %v1632_v52 }
  0x38   :  { %v84_v20 = vmul.f32 0.07692308, %v1653_v50  ;;  %v1202_v10 = vpop.eup %1201  ;;  %1215 = vpow2.f32 %v1634_v9 }
  0x39   :  { %v118_v6 = vmul.f32 0.07692308, %v1662_v5  ;;  %v264_v60 = vadd.f32 %v1198_v18, %v263_v22  ;;  %v1718_v22 = vsel %vm286_vm13, %v1591_v35, 0.0  ;;  %v1204_v43 = vpop.eup %1203 }
  0x3a   :  { %v85_v38 = vadd.f32 -0.09090909, %v84_v20 }
  0x3b   :  { %v119_v15 = vadd.f32 -0.09090909, %v118_v6  ;;  %v265_v20 = vadd.f32 %v1200_v30, %v264_v60  ;;  %v1723_v6 = vsel %vm287_vm14, %v1591_v35, 0.0  ;;  %v1734_v30 = vsel %vm2904_vm2, %v1591_v35, 0.0  ;;  %v1742_v60 = vld [vmem:[%s2863_s1 + $0x90] sm:$0xff] }
  0x3c   :  { %v86_v18 = vmul.f32 %v85_v38, %v1653_v50  ;;  %2905 = vst [vmem:[#allocation18_spill] sm:$0xff] %v1734_v30  ;;  %v1737_v38 = vadd.s32 1, %v1595_v37 }
  0x3d   :  { %v120_v34 = vmul.f32 %v119_v15, %v1662_v5  ;;  %v1747_v15 = vld [vmem:[%s2863_s1 + $0xb0] sm:$0xff]  ;;  %v266_v39 = vadd.f32 %v1202_v10, %v265_v20  ;;  %v1773_v10 = vsel %vm292_vm0, %v1591_v35, 0.0  ;;  %v1206_v20 = vpop.eup %1205 }
  0x3e   :  { %v87_v40 = vadd.f32 0.11111111, %v86_v18  ;;  %2909 = vst [vmem:[#allocation21_spill] sm:$0xff] %v1773_v10  ;;  %v310_v18 = vsel %vm293_vm1, %v1591_v35, 0.0  ;;  %vm312_vm0 = vcmp.eq.s32.totalorder %v1737_v38, 0  ;;  %vm313_vm1 = vcmp.eq.s32.totalorder %v1737_v38, 1  ;;  %v1208_v35 = vpop.eup %1207 }
  0x3f   :  { %v121_v47 = vadd.f32 0.11111111, %v120_v34  ;;  %v267_v34 = vadd.f32 %v1204_v43, %v266_v39  ;;  %vm314_vm4 = vcmp.eq.s32.totalorder %v1737_v38, 2  ;;  %vm315_vm5 = vcmp.eq.s32.totalorder %v1737_v38, 3 }
  0x40   :  { %v88_v16 = vmul.f32 %v87_v40, %v1653_v50  ;;  %vm316_vm6 = vcmp.eq.s32.totalorder %v1737_v38, 4  ;;  %vm317_vm7 = vcmp.eq.s32.totalorder %v1737_v38, 5  ;;  %vm318_vm8 = vcmp.eq.s32.totalorder %v1737_v38, 6 }
  0x41   :  { %v122_v4 = vmul.f32 %v121_v47, %v1662_v5  ;;  %v268_v40 = vadd.f32 %v1206_v20, %v267_v34  ;;  %vm319_vm10 = vcmp.eq.s32.totalorder %v1737_v38, 7  ;;  %vm320_vm11 = vcmp.eq.s32.totalorder %v1737_v38, 8  ;;  %v1210_v34 = vpop.eup %1209 }
  0x42   :  { %v89_v37 = vadd.f32 -0.14285715, %v88_v16  ;;  %v330_v43 = vsel %vm313_vm1, %v1608_v56, 0.0  ;;  %vm321_vm12 = vcmp.eq.s32.totalorder %v1737_v38, 9  ;;  %vm322_vm13 = vcmp.eq.s32.totalorder %v1737_v38, 10  ;;  %v1212_v11 = vpop.eup %1211 }
  0x43   :  { %v123_v39 = vadd.f32 -0.14285715, %v122_v4  ;;  %v329_v4 = vsel %vm312_vm0, %v1608_v56, 0.0  ;;  %vm328_vm14 = vcmp.eq.s32.totalorder %v1737_v38, 16  ;;  %v269_v9 = vadd.f32 %v1208_v35, %v268_v40 }
  0x44   :  { %v90_v47 = vmul.f32 %v89_v37, %v1653_v50  ;;  %vm323_vm15 = vcmp.eq.s32.totalorder %v1737_v38, 11  ;;  %v331_v20 = vsel %vm314_vm4, %v1608_v56, 0.0  ;;  %v347_v3 = vadd.f32 %v330_v43, %v1676_v25  ;;  %v1830_v43 = vpop.eup %1213 }
  0x45   :  { %v124_v16 = vmul.f32 %v123_v39, %v1662_v5  ;;  %v332_v39 = vsel %vm315_vm5, %v1608_v56, 0.0  ;;  %v333_v40 = vsel %vm316_vm6, %v1608_v56, 0.0  ;;  %v334_v35 = vsel %vm317_vm7, %v1608_v56, 0.0  ;;  %v1836_v29 = vpop.eup %1215 }
  0x46   :  { %v91_v36 = vadd.f32 0.2, %v90_v47  ;;  %v346_v47 = vadd.f32 %v329_v4, %v1671_v26  ;;  %v335_v26 = vsel %vm318_vm8, %v1608_v56, 0.0  ;;  %v336_v25 = vsel %vm319_vm10, %v1608_v56, 0.0 }
  0x47   :  { %v125_v52 = vadd.f32 0.2, %v124_v16  ;;  %v348_v4 = vadd.f32 %v331_v20, %v1682_v48  ;;  %v270_v1 = vadd.f32 %v1210_v34, %v269_v9  ;;  %v337_v10 = vsel %vm320_vm11, %v1608_v56, 0.0 }
  0x48   :  { %v92_v37 = vmul.f32 %v91_v36, %v1653_v50  ;;  %v345_v36 = vsel %vm328_vm14, %v1608_v56, 0.0  ;;  %v363_v30 = vmul.f32 %v346_v47, %v1418_v45  ;;  %v364_v63 = vmul.f32 %v347_v3, %v1433_v53  ;;  %v1858_v45 = vld [vmem:[%s2863_s1 + $0xa0] sm:$0xff] }
  0x49   :  { %v126_v16 = vmul.f32 %v125_v52, %v1662_v5  ;;  %v362_v0 = vadd.f32 %v345_v36, %v310_v18  ;;  %v338_v9 = vsel %vm321_vm12, %v1608_v56, 0.0  ;;  %v1848_v20 = vsel %vm322_vm13, %v1608_v56, 0.0  ;;  %v1872_v18 = vld [vmem:[%s2863_s1 + $0xc8] sm:$0xff] }
  0x4a   :  { %v93_v41 = vadd.f32 -0.33333334, %v92_v37  ;;  %v349_v37 = vadd.f32 %v332_v39, %v1687_v42  ;;  %vm324_vm2 = vcmp.eq.s32.totalorder %v1737_v38, 12  ;;  %v350_v3 = vadd.f32 %v333_v40, %v1692_v51  ;;  %v1867_v42 = vld [vmem:[%s2863_s1 + $0xc0] sm:$0xff]  ;;  %v1885_v39 = vld [vmem:[%s2863_s1 + $0xd8] sm:$0xff] }
  0x4b   :  { %v127_v52 = vadd.f32 -0.33333334, %v126_v16  ;;  %v353_v34 = vadd.f32 %v336_v25, %v1707_v49  ;;  %vm135_vm0 = vcmp.lt.f32.partialorder %v1523_v24, 0.0  ;;  %vm325_vm1 = vcmp.eq.s32.totalorder %v1737_v38, 13  ;;  %v1909_v16 = vld [vmem:[%s2863_s1 + $0xf0] sm:$0xff]  ;;  %v1931_v25 = vld [vmem:[%s2863_s1 + $0x100] sm:$0xff] }
  0x4c   :  { %v94_v2 = vmul.f32 %v93_v41, %v1653_v50  ;;  %v1853_v41 = vsel %vm323_vm15, %v1608_v56, 0.0  ;;  %v351_v50 = vadd.f32 %v334_v35, %v1697_v61  ;;  %v271_v61 = vadd.f32 %v1212_v11, %v270_v1 }
  0x4d   :  { %v128_v48 = vmul.f32 %v127_v52, %v1662_v5  ;;  %v365_v5 = vmul.f32 %v348_v4, %v1438_v54  ;;  %v352_v54 = vadd.f32 %v335_v26, %v1702_v19  ;;  %vm326_vm4 = vcmp.eq.s32.totalorder %v1737_v38, 14  ;;  %v1899_v19 = vld [vmem:[%s2863_s1 + $0xe0] sm:$0xff]  ;;  %v1936_v4 = vld [vmem:[%s2863_s1 + $0x108] sm:$0xff] }
  0x4e   :  { %v95_v53 = vadd.f32 1.0, %v94_v2  ;;  %v1877_v2 = vld [vmem:[%s2863_s1 + $0xd0] sm:$0xff]  ;;  %vm327_vm5 = vcmp.eq.s32.totalorder %v1737_v38, 15  ;;  %v366_v1 = vmul.f32 %v349_v37, %v1448_v57  ;;  %v1894_v11 = vmul.f32 %v362_v0, %v1513_v17  ;;  %2911 = vst [vmem:[#allocation23_spill] sm:$0xff] %v1899_v19 }
  0x4f   :  { %v129_v51 = vadd.f32 1.0, %v128_v48  ;;  %v380_v49 = vadd.f32 %v364_v63, %v363_v30  ;;  %v1915_v63 = vld [vmem:[%s2863_s1 + $0xf8] sm:$0xff]  ;;  %v423_v0 = vmax.f32 %v1858_v45, %v1867_v42  ;;  %v2912_v17 = vmax.f32 %v1584_v31, %v1589_v32 }
  0x50   :  { %v96_v47 = vmul.f32 %v95_v53, %v1646_v12  ;;  %2910 = vst [vmem:[#allocation22_spill] sm:$0xff] %v1894_v11  ;;  %v1904_v12 = vld [vmem:[%s2863_s1 + $0xe8] sm:$0xff]  ;;  %v2913_v40 = vmax.f32 %v1742_v60, %v1747_v15  ;;  %v2914_v52 = vmax.f32 %v1758_v33, %v1763_v7  ;;  %vm2915_vm6 = vcmp.gt.f32.partialorder %v1567_v44, 0.41421357 }
  0x51   :  { %v130_v57 = vmul.f32 %v129_v51, %v1658_v14  ;;  %v424_v30 = vmax.f32 %v2912_v17, %v1872_v18  ;;  %v367_v14 = vmul.f32 %v350_v3, %v1423_v46  ;;  %v381_v26 = vadd.f32 %v380_v49, %v365_v5 }
  0x52   :  { %v425_v35 = vmax.f32 %v2913_v40, %v1877_v2  ;;  %v97_v36 = vadd.f32 0.7853982, %v96_v47  ;;  %v426_v37 = vmax.f32 %v2914_v52, %v1885_v39  ;;  %v427_v53 = vmax.f32 %v423_v0, %v1899_v19 }
  0x53   :  { %v131_v48 = vadd.f32 0.7853982, %v130_v57  ;;  %v428_v46 = vmax.f32 %v424_v30, %v1904_v12  ;;  %v368_v51 = vmul.f32 %v351_v50, %v1443_v55  ;;  %v382_v49 = vadd.f32 %v381_v26, %v366_v1 }
  0x54   :  { %v429_v3 = vmax.f32 %v425_v35, %v1909_v16  ;;  %v98_v5 = vsel %vm2915_vm6, %v97_v36, %v96_v47  ;;  %v430_v17 = vmax.f32 %v426_v37, %v1915_v63  ;;  %v431_v52 = vmax.f32 %v427_v53, %v1931_v25  ;;  %v2921_v53 = vld [vmem:[#allocation7_spill] sm:$0xff] }
  0x55   :  { %v99_v40 = vsub.f32 1.5707964, %v98_v5  ;;  %v132_v11 = vsel %vm111_vm9, %v131_v48, %v130_v57  ;;  %v432_v0 = vmax.f32 %v428_v46, %v1936_v4  ;;  %v354_v30 = vadd.f32 %v337_v10, %v1712_v28 }
  0x56   :  { %v133_v19 = vsub.f32 1.5707964, %v132_v11  ;;  %v369_v35 = vmul.f32 %v352_v54, %v1453_v58  ;;  %v383_v44 = vadd.f32 %v382_v49, %v367_v14  ;;  %vm2916_vm7 = vcmp.gt.f32.partialorder %v1527_v27, 1.0 }
  0x57   :  { %v100_v55 = vsel %vm2916_vm7, %v99_v40, %v98_v5  ;;  %v355_v50 = vadd.f32 %v338_v9, %v1718_v22  ;;  %v433_v47 = vmax.f32 %v432_v0, %v429_v3  ;;  %v434_v1 = vmax.f32 %v430_v17, %v431_v52  ;;  %v2923_v5 = vld [vmem:[#allocation20_spill] sm:$0xff] }
  0x58   :  { %v102_v36 = vsub.f32 0.0, %v100_v55  ;;  %vm2917_vm9 = vcmp.gt.f32.partialorder %v1532_v13, 1.0  ;;  %v370_v57 = vmul.f32 %v353_v34, %v1458_v59  ;;  %v384_v26 = vadd.f32 %v383_v44, %v368_v51  ;;  %v2925_v52 = vld [vmem:[#allocation8_spill] sm:$0xff] }
  0x59   :  { %v134_v23 = vsel %vm2917_vm9, %v133_v19, %v132_v11  ;;  %v272_v28 = vadd.f32 %v1830_v43, %v271_v61  ;;  %v341_v58 = vsel %vm324_vm2, %v1608_v56, 0.0  ;;  %v1965_v27 = vmax.f32 %v433_v47, %v434_v1  ;;  %v2926_v47 = vld [vmem:[#allocation15_spill] sm:$0xff] }
  0x5a   :  { %v136_v37 = vsub.f32 0.0, %v134_v23  ;;  %v103_v22 = vsel %vm101_vm3, %v102_v36, %v100_v55  ;;  %v356_v10 = vadd.f32 %v1848_v20, %v1723_v6  ;;  %v371_v13 = vmul.f32 %v354_v30, %v1465_v62  ;;  %v2919_v6 = vld [vmem:[#allocation6_spill] sm:$0xff]  ;;  %v2927_v36 = vld [vmem:[#allocation9_spill] sm:$0xff] }
  0x5b   :  { %2918 = vst [vmem:[#allocation24_spill] sm:$0xff] %v1965_v27  ;;  %v385_v9 = vadd.f32 %v384_v26, %v369_v35  ;;  %v342_v43 = vsel %vm325_vm1, %v1608_v56, 0.0  ;;  %v343_v61 = vsel %vm326_vm4, %v1608_v56, 0.0  ;;  %v344_v21 = vsel %vm327_vm5, %v1608_v56, 0.0  ;;  %v2920_v56 = vld [vmem:[#allocation18_spill] sm:$0xff] }
  0x5c   :  { %v137_v59 = vsel %vm135_vm0, %v136_v37, %v134_v23  ;;  %v357_v62 = vadd.f32 %v1853_v41, %v1729_v8  ;;  %v372_v20 = vmul.f32 %v355_v50, %v2919_v6  ;;  %v273_v34 = vadd.f32 %v1836_v29, %v272_v28  ;;  %v2922_v41 = vld [vmem:[#allocation19_spill] sm:$0xff]  ;;  %v2924_v29 = vld [vmem:[#allocation21_spill] sm:$0xff]  ;;  %v2928_v37 = vld [vmem:[#allocation10_spill] sm:$0xff] }
  0x5d   :  { %v138_v54 = vsub.f32 %v103_v22, %v137_v59  ;;  %v386_v24 = vadd.f32 %v385_v9, %v370_v57  ;;  %v436_v11 = vsub.f32 %v1584_v31, %v1965_v27  ;;  %v437_v19 = vsub.f32 %v1742_v60, %v1965_v27  ;;  %v2929_v59 = vld [vmem:[#allocation11_spill] sm:$0xff] }
  0x5e   :  { %v438_v14 = vsub.f32 %v1758_v33, %v1965_v27  ;;  %v358_v48 = vadd.f32 %v341_v58, %v2920_v56  ;;  %v373_v46 = vmul.f32 %v356_v10, %v2921_v53  ;;  %v359_v3 = vadd.f32 %v342_v43, %v2922_v41 }
  0x5f   :  { %v139_v38 = vmul.f32 0.40528473, %v138_v54  ;;  %v387_v8 = vadd.f32 %v386_v24, %v371_v13  ;;  %v360_v51 = vadd.f32 %v343_v61, %v2923_v5  ;;  %v361_v49 = vadd.f32 %v344_v21, %v2924_v29  ;;  %v2935_v5 = vld [vmem:[#allocation16_spill] sm:$0xff] }
  0x60   :  { %v439_v17 = vsub.f32 %v1858_v45, %v1965_v27  ;;  %v374_v0 = vmul.f32 %v357_v62, %v2925_v52  ;;  %v440_v35 = vsub.f32 %v1589_v32, %v1965_v27  ;;  %1217 = vlog2.f32 %v273_v34  ;;  %v2930_v62 = vld [vmem:[#allocation12_spill] sm:$0xff] }
  0x61   :  { %v2000_v40 = vmul.f32 %v139_v38, %v138_v54  ;;  %v388_v30 = vadd.f32 %v387_v8, %v372_v20  ;;  %v453_v44 = vmul.f32 1.442695, %v436_v11  ;;  %v455_v55 = vmul.f32 1.442695, %v437_v19  ;;  %v2931_v20 = vld [vmem:[#allocation17_spill] sm:$0xff]  ;;  %v2933_v38 = vld [vmem:[#allocation4_spill] sm:$0xff] }
  0x62   :  { %v457_v50 = vmul.f32 1.442695, %v438_v14  ;;  %v375_v23 = vmul.f32 %v358_v48, %v2927_v36  ;;  %v441_v26 = vsub.f32 %v1747_v15, %v1965_v27  ;;  %v376_v28 = vmul.f32 %v359_v3, %v2928_v37  ;;  %v2932_v14 = vld [vmem:[#allocation2_spill] sm:$0xff] }
  0x63   :  { %v141_v1 = vsub.f32 %v2000_v40, %v2926_v47  ;;  %v389_v57 = vadd.f32 %v388_v30, %v373_v46  ;;  %v442_v58 = vsub.f32 %v1763_v7, %v1965_v27  ;;  %1219 = vpow2.f32 %v453_v44 }
  0x64   :  { %v459_v22 = vmul.f32 1.442695, %v439_v17  ;;  %1221 = vpow2.f32 %v455_v55  ;;  %v461_v9 = vmul.f32 1.442695, %v440_v35  ;;  %v377_v43 = vmul.f32 %v360_v51, %v2929_v59  ;;  %v2937_v55 = vld [vmem:[#allocation22_spill] sm:$0xff] }
  0x65   :  { %v142_v10 = vadd.f32 1.0000001, %v141_v1  ;;  %v390_v13 = vadd.f32 %v389_v57, %v374_v0  ;;  %1223 = vpow2.f32 %v457_v50  ;;  %v443_v21 = vsub.f32 %v1867_v42, %v1965_v27  ;;  %v2939_v1 = vld [vmem:[#allocation23_spill] sm:$0xff] }
  0x66   :  { %v463_v54 = vmul.f32 1.442695, %v441_v26  ;;  %v378_v6 = vmul.f32 %v361_v49, %v2930_v62  ;;  %v399_v24 = vadd.f32 1.0, %v2931_v20  ;;  %v444_v11 = vsub.f32 %v1872_v18, %v1965_v27 }
  0x67   :  { %1225 = vrcp.f32 %v142_v10  ;;  %v391_v61 = vadd.f32 %v390_v13, %v375_v23  ;;  %v465_v19 = vmul.f32 1.442695, %v442_v58  ;;  %v2934_v56 = vsub.f32 %v2932_v14, %v2933_v38 }
  0x68   :  { %1227 = vpow2.f32 %v459_v22  ;;  %v1161_v53 = vtrunc.f32 %v2931_v20  ;;  %v445_v8 = vsub.f32 %v1877_v2, %v1965_v27  ;;  %v467_v41 = vmul.f32 1.442695, %v443_v21 }
  0x69   :  { %v392_v34 = vadd.f32 %v391_v61, %v376_v28  ;;  %1229 = vpow2.f32 %v461_v9  ;;  %v2023_v48 = vmax.f32 %v2934_v56, 0.0  ;;  %v2936_v51 = vmin.f32 %v2935_v5, 15.99 }
  0x6a   :  { %1231 = vpow2.f32 %v463_v54  ;;  %v1218_v3 = vpop.eup %1217  ;;  %v446_v17 = vsub.f32 %v1885_v39, %v1965_v27  ;;  %v469_v52 = vmul.f32 1.442695, %v444_v11  ;;  %v2035_v35 = vcvt.f32.s32 %v1161_v53 }
  0x6b   :  { %v393_v46 = vadd.f32 %v392_v34, %v377_v43  ;;  %v2030_v29 = vsub.f32 %v399_v24, %v2936_v51  ;;  %1233 = vpow2.f32 %v465_v19  ;;  %v447_v36 = vsub.f32 %v2939_v1, %v1965_v27  ;;  %v2940_v19 = vld [vmem:[#allocation13_spill] sm:$0xff]  ;;  %v1102_v51 = vld [vmem:[%s2862_s0 + $0x50] sm:$0xff] }
  0x6c   :  { %1235 = vpow2.f32 %v467_v41  ;;  %v471_v23 = vmul.f32 1.442695, %v445_v8  ;;  %vm506_vm8 = vcmp.eq.s32.totalorder %v2035_v35, 0  ;;  %vm507_vm10 = vcmp.eq.s32.totalorder %v2035_v35, 1 }
  0x6d   :  { %v394_v49 = vadd.f32 %v393_v46, %v378_v6  ;;  %v1220_v0 = vpop.eup %1219  ;;  %v2043_v26 = vsub.f32 1.0, %v2030_v29  ;;  %v448_v58 = vsub.f32 %v1904_v12, %v1965_v27  ;;  %1237 = vpow2.f32 %v469_v52 }
  0x6e   :  { %v1222_v44 = vpop.eup %1221  ;;  %v473_v22 = vmul.f32 1.442695, %v446_v17  ;;  %vm508_vm11 = vcmp.eq.s32.totalorder %v2035_v35, 2  ;;  %vm509_vm12 = vcmp.eq.s32.totalorder %v2035_v35, 3  ;;  %v449_v9 = vsub.f32 %v1909_v16, %v1965_v27 }
  0x6f   :  { %v2038_v50 = vadd.f32 %v394_v49, %v2937_v55  ;;  %v1224_v57 = vpop.eup %1223  ;;  %v487_v37 = vadd.f32 %v1222_v44, %v1220_v0  ;;  %v450_v59 = vsub.f32 %v1915_v63, %v1965_v27  ;;  %v451_v21 = vsub.f32 %v1931_v25, %v1965_v27 }
  0x70   :  { %v452_v54 = vsub.f32 %v1936_v4, %v1965_v27  ;;  %1239 = vpow2.f32 %v471_v23  ;;  %v475_v62 = vmul.f32 1.442695, %v447_v36  ;;  %v2061_v20 = vmul.f32 0.6931472, %v1218_v3  ;;  %v2294_v27 = vld [vmem:[%s2863_s1 + $0x190] sm:$0xff] }
  0x71   :  { %2938 = vst [vmem:[#allocation6_spill] sm:$0xff] %v2038_v50  ;;  %v1226_v28 = vpop.eup %1225  ;;  %v488_v43 = vadd.f32 %v1224_v57, %v487_v37  ;;  %vm510_vm13 = vcmp.eq.s32.totalorder %v2035_v35, 4  ;;  %1241 = vpow2.f32 %v473_v22  ;;  %v477_v11 = vmul.f32 1.442695, %v448_v58 }
  0x72   :  { %v1228_v10 = vpop.eup %1227  ;;  %v144_v13 = vmul.f32 %v1226_v28, %v2000_v40  ;;  %vm511_vm14 = vcmp.eq.s32.totalorder %v2035_v35, 5  ;;  %vm512_vm15 = vcmp.eq.s32.totalorder %v2035_v35, 6  ;;  %v479_v38 = vmul.f32 1.442695, %v449_v9 }
  0x73   :  { %v1230_v61 = vpop.eup %1229  ;;  %v489_v24 = vadd.f32 %v1228_v10, %v488_v43  ;;  %vm513_vm2 = vcmp.eq.s32.totalorder %v2035_v35, 7  ;;  %1243 = vpow2.f32 %v475_v62  ;;  %v483_v46 = vmul.f32 1.442695, %v451_v21 }
  0x74   :  { %v147_v6 = vmul.f32 %v144_v13, %v2000_v40  ;;  %v1232_v34 = vpop.eup %1231  ;;  %v481_v40 = vmul.f32 1.442695, %v450_v59  ;;  %v485_v8 = vmul.f32 1.442695, %v452_v54  ;;  %vm514_vm3 = vcmp.eq.s32.totalorder %v2035_v35, 8 }
  0x75   :  { %v490_v56 = vadd.f32 %v1230_v61, %v489_v24  ;;  %v1234_v53 = vpop.eup %1233  ;;  %vm515_vm0 = vcmp.eq.s32.totalorder %v2035_v35, 9  ;;  %1245 = vpow2.f32 %v477_v11  ;;  %vm516_vm1 = vcmp.eq.s32.totalorder %v2035_v35, 10  ;;  %v2152_v11 = vld [vmem:[%s2863_s1 + $0x110] sm:$0xff] }
  0x76   :  { %v148_v14 = vadd.f32 %v147_v6, %v2940_v19  ;;  %v1236_v5 = vpop.eup %1235  ;;  %vm517_vm4 = vcmp.eq.s32.totalorder %v2035_v35, 11  ;;  %v2077_v49 = vadd.s32 1, %v2035_v35  ;;  %vm518_vm5 = vcmp.eq.s32.totalorder %v2035_v35, 12  ;;  %v2157_v19 = vld [vmem:[%s2863_s1 + $0x118] sm:$0xff] }
  0x77   :  { %v491_v3 = vadd.f32 %v1232_v34, %v490_v56  ;;  %vm519_vm6 = vcmp.eq.s32.totalorder %v2035_v35, 13  ;;  %v1238_v52 = vpop.eup %1237  ;;  %1247 = vpow2.f32 %v479_v38  ;;  %vm522_vm7 = vcmp.eq.s32.totalorder %v2035_v35, 16 }
  0x78   :  { %v149_v41 = vsub.f32 %v2926_v47, %v148_v14  ;;  %v523_v0 = vsel %vm506_vm8, %v2030_v29, 0.0  ;;  %v524_v44 = vsel %vm507_vm10, %v2030_v29, 0.0  ;;  %v525_v23 = vsel %vm508_vm11, %v2030_v29, 0.0  ;;  %v2162_v14 = vld [vmem:[%s2863_s1 + $0x130] sm:$0xff] }
  0x79   :  { %v492_v47 = vadd.f32 %v1234_v53, %v491_v3  ;;  %v526_v57 = vsel %vm509_vm12, %v2030_v29, 0.0  ;;  %1249 = vpow2.f32 %v481_v40  ;;  %v2097_v28 = vsel %vm510_vm13, %v2030_v29, 0.0  ;;  %v2188_v3 = vld [vmem:[%s2863_s1 + $0x140] sm:$0xff] }
  0x7a   :  { %v150_v17 = vsub.f32 1.0, %v149_v41  ;;  %v1240_v37 = vpop.eup %1239  ;;  %vm541_vm9 = vcmp.eq.s32.totalorder %v2077_v49, 0  ;;  %vm542_vm8 = vcmp.eq.s32.totalorder %v2077_v49, 1  ;;  %v2107_v22 = vsel %vm511_vm14, %v2030_v29, 0.0  ;;  %v2183_v41 = vld [vmem:[%s2863_s1 + $0x138] sm:$0xff] }
  0x7b   :  { %v493_v36 = vadd.f32 %v1236_v5, %v492_v47  ;;  %v2112_v10 = vsel %vm512_vm15, %v2030_v29, 0.0  ;;  %v2117_v13 = vsel %vm513_vm2, %v2030_v29, 0.0  ;;  %v1242_v9 = vpop.eup %1241  ;;  %v2122_v59 = vsel %vm514_vm3, %v2030_v29, 0.0 }
  0x7c   :  { %v151_v55 = vmul.f32 %v1102_v51, %v150_v17  ;;  %v2127_v43 = vsel %vm515_vm0, %v2030_v29, 0.0  ;;  %v2132_v61 = vsel %vm516_vm1, %v2030_v29, 0.0  ;;  %vm543_vm10 = vcmp.eq.s32.totalorder %v2077_v49, 2 }
  0x7d   :  { %v494_v58 = vadd.f32 %v1238_v52, %v493_v36  ;;  %v2138_v54 = vsel %vm517_vm4, %v2030_v29, 0.0  ;;  %v558_v62 = vsel %vm541_vm9, %v2043_v26, 0.0  ;;  %v559_v6 = vsel %vm542_vm8, %v2043_v26, 0.0  ;;  %v1244_v24 = vpop.eup %1243 }
  0x7e   :  { %152 = vst [vmem:[%s2864_s2] sm:$0xff] %v151_v55  ;;  %1251 = vpow2.f32 %v483_v46  ;;  %v2145_v34 = vsel %vm518_vm5, %v2030_v29, 0.0  ;;  %vm544_vm11 = vcmp.eq.s32.totalorder %v2077_v49, 3  ;;  %vm557_vm12 = vcmp.eq.s32.totalorder %v2077_v49, 16  ;;  %v2178_v46 = vld [vmem:[%s2863_s1 + $0x120] sm:$0xff] }
  0x7f   :  { %v495_v21 = vadd.f32 %v1240_v37, %v494_v58  ;;  %v2167_v56 = vsel %vm519_vm6, %v2030_v29, 0.0  ;;  %v539_v53 = vsel %vm522_vm7, %v2030_v29, 0.0  ;;  %v560_v40 = vsel %vm543_vm10, %v2043_v26, 0.0  ;;  %v1246_v5 = vpop.eup %1245 }
  0x80   :  { %1253 = vpow2.f32 %v485_v8  ;;  %vm545_vm13 = vcmp.eq.s32.totalorder %v2077_v49, 4  ;;  %v575_v51 = vadd.f32 %v558_v62, %v523_v0  ;;  %v576_v17 = vadd.f32 %v559_v6, %v524_v44 }
  0x81   :  { %v496_v38 = vadd.f32 %v1242_v9, %v495_v21  ;;  %v561_v52 = vsel %vm544_vm11, %v2043_v26, 0.0  ;;  %v574_v55 = vsel %vm557_vm12, %v2043_v26, 0.0  ;;  %v650_v36 = vmax.f32 %v2152_v11, %v2162_v14  ;;  %v1248_v37 = vpop.eup %1247 }
  0x82   :  { %vm546_vm14 = vcmp.eq.s32.totalorder %v2077_v49, 5  ;;  %v577_v8 = vadd.f32 %v560_v40, %v525_v23  ;;  %v651_v0 = vmax.f32 %v2157_v19, %v2183_v41  ;;  %v652_v44 = vmax.f32 %v2178_v46, %v2188_v3 }
  0x83   :  { %v497_v47 = vadd.f32 %v1244_v24, %v496_v38  ;;  %vm547_vm15 = vcmp.eq.s32.totalorder %v2077_v49, 6  ;;  %vm548_vm2 = vcmp.eq.s32.totalorder %v2077_v49, 7  ;;  %v562_v9 = vsel %vm545_vm13, %v2043_v26, 0.0  ;;  %v1250_v21 = vpop.eup %1249 }
  0x84   :  { %v578_v62 = vadd.f32 %v561_v52, %v526_v57  ;;  %v591_v6 = vadd.f32 %v574_v55, %v539_v53  ;;  %v592_v24 = vmul.f32 %v1584_v31, %v575_v51  ;;  %v593_v23 = vmul.f32 %v1742_v60, %v576_v17  ;;  %v2227_v57 = vld [vmem:[%s2863_s1 + $0x148] sm:$0xff]  ;;  %v2232_v53 = vld [vmem:[%s2863_s1 + $0x150] sm:$0xff]  ;;  %v2237_v51 = vld [vmem:[%s2863_s1 + $0x158] sm:$0xff] }
  0x85   :  { %v498_v58 = vadd.f32 %v1246_v5, %v497_v47  ;;  %vm549_vm3 = vcmp.eq.s32.totalorder %v2077_v49, 8  ;;  %vm550_vm0 = vcmp.eq.s32.totalorder %v2077_v49, 9  ;;  %v563_v40 = vsel %vm546_vm14, %v2043_v26, 0.0  ;;  %v2217_v5 = vld [vmem:[%s2863_s1 + $0x128] sm:$0xff]  ;;  %v2249_v47 = vld [vmem:[%s2863_s1 + $0x160] sm:$0xff] }
  0x86   :  { %vm520_vm1 = vcmp.eq.s32.totalorder %v2035_v35, 14  ;;  %vm551_vm4 = vcmp.eq.s32.totalorder %v2077_v49, 10  ;;  %vm552_vm5 = vcmp.eq.s32.totalorder %v2077_v49, 11  ;;  %v579_v31 = vadd.f32 %v562_v9, %v2097_v28  ;;  %v2259_v9 = vld [vmem:[%s2863_s1 + $0x168] sm:$0xff] }
  0x87   :  { %v499_v38 = vadd.f32 %v1248_v37, %v498_v58  ;;  %v594_v60 = vmul.f32 %v1758_v33, %v577_v8  ;;  %vm553_vm6 = vcmp.eq.s32.totalorder %v2077_v49, 12  ;;  %v564_v33 = vsel %vm547_vm15, %v2043_v26, 0.0 }
  0x88   :  { %v565_v28 = vsel %vm548_vm2, %v2043_v26, 0.0  ;;  %v1252_v52 = vpop.eup %1251  ;;  %v580_v55 = vadd.f32 %v563_v40, %v2107_v22  ;;  %v595_v37 = vmul.f32 %v1858_v45, %v578_v62  ;;  %v2254_v8 = vmul.f32 %v1936_v4, %v591_v6  ;;  %v2269_v22 = vld [vmem:[%s2863_s1 + $0x178] sm:$0xff]  ;;  %v2277_v4 = vld [vmem:[%s2863_s1 + $0x180] sm:$0xff] }
  0x89   :  { %v500_v17 = vadd.f32 %v1250_v21, %v499_v38  ;;  %v609_v58 = vadd.f32 %v593_v23, %v592_v24  ;;  %v2264_v21 = vld [vmem:[%s2863_s1 + $0x170] sm:$0xff]  ;;  %v566_v45 = vsel %vm549_vm3, %v2043_v26, 0.0  ;;  %v653_v62 = vmax.f32 %v2217_v5, %v2227_v57 }
  0x8a   :  { %2941 = vst [vmem:[#allocation18_spill] sm:$0xff] %v2254_v8  ;;  %v654_v6 = vmax.f32 %v650_v36, %v2232_v53  ;;  %v655_v24 = vmax.f32 %v651_v0, %v2237_v51  ;;  %v1254_v23 = vpop.eup %1253  ;;  %vm521_vm7 = vcmp.eq.s32.totalorder %v2035_v35, 15  ;;  %v581_v38 = vadd.f32 %v564_v33, %v2112_v10  ;;  %v2289_v8 = vld [vmem:[%s2863_s1 + $0x188] sm:$0xff] }
  0x8b   :  { %v596_v40 = vmul.f32 %v1589_v32, %v579_v31  ;;  %v610_v30 = vadd.f32 %v609_v58, %v594_v60  ;;  %v656_v36 = vmax.f32 %v652_v44, %v2249_v47  ;;  %v501_v0 = vadd.f32 %v1252_v52, %v500_v17 }
  0x8c   :  { %v657_v50 = vmax.f32 %v653_v62, %v2259_v9  ;;  %v658_v10 = vmax.f32 %v654_v6, %v2264_v21  ;;  %v659_v32 = vmax.f32 %v655_v24, %v2269_v22  ;;  %v582_v31 = vadd.f32 %v565_v28, %v2117_v13 }
  0x8d   :  { %v597_v60 = vmul.f32 %v1747_v15, %v580_v55  ;;  %v611_v33 = vadd.f32 %v610_v30, %v595_v37  ;;  %v660_v58 = vmax.f32 %v656_v36, %v2277_v4  ;;  %vm554_vm9 = vcmp.eq.s32.totalorder %v2077_v49, 13 }
  0x8e   :  { %v567_v44 = vsel %vm550_vm0, %v2043_v26, 0.0  ;;  %v661_v17 = vmax.f32 %v657_v50, %v2289_v8  ;;  %v662_v52 = vmax.f32 %v658_v10, %v2294_v27  ;;  %vm555_vm8 = vcmp.eq.s32.totalorder %v2077_v49, 14 }
  0x8f   :  { %v583_v62 = vadd.f32 %v566_v45, %v2122_v59  ;;  %v598_v13 = vmul.f32 %v1763_v7, %v581_v38  ;;  %v612_v15 = vadd.f32 %v611_v33, %v596_v40  ;;  %v502_v30 = vadd.f32 %v1254_v23, %v501_v0 }
  0x90   :  { %v568_v28 = vsel %vm551_vm4, %v2043_v26, 0.0  ;;  %v663_v55 = vmax.f32 %v662_v52, %v659_v32  ;;  %v664_v37 = vmax.f32 %v660_v58, %v661_v17  ;;  %v569_v50 = vsel %vm552_vm5, %v2043_v26, 0.0 }
  0x91   :  { %v584_v6 = vadd.f32 %v567_v44, %v2127_v43  ;;  %v599_v24 = vmul.f32 %v1867_v42, %v582_v31  ;;  %v613_v36 = vadd.f32 %v612_v15, %v597_v60  ;;  %v537_v7 = vsel %vm520_vm1, %v2030_v29, 0.0 }
  0x92   :  { %vm556_vm10 = vcmp.eq.s32.totalorder %v2077_v49, 15  ;;  %v570_v59 = vsel %vm553_vm6, %v2043_v26, 0.0  ;;  %v2327_v45 = vmax.f32 %v663_v55, %v664_v37  ;;  %v571_v23 = vsel %vm554_vm9, %v2043_v26, 0.0 }
  0x93   :  { %v585_v43 = vadd.f32 %v568_v28, %v2132_v61  ;;  %v600_v42 = vmul.f32 %v1872_v18, %v583_v62  ;;  %v614_v38 = vadd.f32 %v613_v36, %v598_v13  ;;  %1255 = vlog2.f32 %v502_v30 }
  0x94   :  { %2942 = vst [vmem:[#allocation7_spill] sm:$0xff] %v2327_v45  ;;  %v572_v40 = vsel %vm555_vm8, %v2043_v26, 0.0  ;;  %v586_v0 = vadd.f32 %v569_v50, %v2138_v54  ;;  %v666_v10 = vsub.f32 %v2152_v11, %v2327_v45  ;;  %v601_v32 = vmul.f32 %v1877_v2, %v584_v6 }
  0x95   :  { %v615_v31 = vadd.f32 %v614_v38, %v599_v24  ;;  %v667_v60 = vsub.f32 %v2157_v19, %v2327_v45  ;;  %v668_v18 = vsub.f32 %v2178_v46, %v2327_v45  ;;  %v538_v61 = vsel %vm521_vm7, %v2030_v29, 0.0 }
  0x96   :  { %v587_v33 = vadd.f32 %v570_v59, %v2145_v34  ;;  %v2943_v54 = vmin.f32 %v2023_v48, 15.99  ;;  %v669_v44 = vsub.f32 %v2217_v5, %v2327_v45  ;;  %v573_v2 = vsel %vm556_vm10, %v2043_v26, 0.0  ;;  %v2946_v48 = vld [vmem:[#allocation6_spill] sm:$0xff] }
  0x97   :  { %v602_v17 = vmul.f32 %v1885_v39, %v585_v43  ;;  %v616_v52 = vadd.f32 %v615_v31, %v600_v42  ;;  %v670_v62 = vsub.f32 %v2162_v14, %v2327_v45  ;;  %v588_v29 = vadd.f32 %v571_v23, %v2167_v56  ;;  %v2944_v23 = vld [vmem:[#allocation14_spill] sm:$0xff] }
  0x98   :  { %v627_v58 = vfloor.f32 %v2943_v54  ;;  %v589_v35 = vadd.f32 %v572_v40, %v537_v7  ;;  %v603_v34 = vmul.f32 %v2939_v1, %v586_v0  ;;  %v683_v13 = vmul.f32 1.442695, %v666_v10 }
  0x99   :  { %v617_v15 = vadd.f32 %v616_v52, %v601_v32  ;;  %v671_v30 = vsub.f32 %v2183_v41, %v2327_v45  ;;  %v685_v28 = vmul.f32 1.442695, %v667_v60  ;;  %v687_v55 = vmul.f32 1.442695, %v668_v18  ;;  %v2947_v52 = vld [vmem:[#allocation24_spill] sm:$0xff] }
  0x9a   :  { %v604_v26 = vmul.f32 %v1904_v12, %v587_v33  ;;  %v629_v49 = vadd.f32 1.0, %v627_v58  ;;  %1257 = vpow2.f32 %v683_v13  ;;  %v689_v39 = vmul.f32 1.442695, %v669_v44 }
  0x9b   :  { %v618_v37 = vadd.f32 %v617_v15, %v602_v17  ;;  %v672_v50 = vsub.f32 %v2188_v3, %v2327_v45  ;;  %1259 = vpow2.f32 %v685_v28  ;;  %v691_v56 = vmul.f32 1.442695, %v670_v62 }
  0x9c   :  { %v590_v6 = vadd.f32 %v573_v2, %v538_v61  ;;  %v605_v1 = vmul.f32 %v1909_v16, %v588_v29  ;;  %v1163_v24 = vtrunc.f32 %v627_v58  ;;  %1261 = vpow2.f32 %v687_v55 }
  0x9d   :  { %v619_v36 = vadd.f32 %v618_v37, %v603_v34  ;;  %v673_v7 = vsub.f32 %v2227_v57, %v2327_v45  ;;  %1263 = vpow2.f32 %v689_v39  ;;  %v693_v12 = vmul.f32 1.442695, %v671_v30  ;;  %v1256_v59 = vpop.eup %1255  ;;  %v2948_v30 = vld [vmem:[#allocation18_spill] sm:$0xff] }
  0x9e   :  { %v276_v43 = vadd.f32 %v2061_v20, %v2944_v23  ;;  %v606_v42 = vmul.f32 %v1915_v63, %v589_v35  ;;  %v2945_v38 = vmov %v2943_v54  ;;  %v674_v16 = vsub.f32 %v2232_v53, %v2327_v45 }
  0x9f   :  { %v2374_v40 = vsub.f32 %v629_v49, %v2945_v38  ;;  %v620_v0 = vadd.f32 %v619_v36, %v604_v26  ;;  %1265 = vpow2.f32 %v691_v56  ;;  %v695_v10 = vmul.f32 1.442695, %v672_v50 }
  0xa0   :  { %v607_v32 = vmul.f32 %v1931_v25, %v590_v6  ;;  %v2379_v31 = vcvt.f32.s32 %v1163_v24  ;;  %v675_v60 = vsub.f32 %v2237_v51, %v2327_v45  ;;  %v504_v20 = vmul.f32 0.6931472, %v1256_v59 }
  0xa1   :  { %v621_v18 = vadd.f32 %v620_v0, %v605_v1  ;;  %1267 = vpow2.f32 %v693_v12  ;;  %v697_v63 = vmul.f32 1.442695, %v673_v7  ;;  %v396_v61 = vsub.f32 %v276_v43, %v2946_v48 }
  0xa2   :  { %v2385_v33 = vsub.f32 1.0, %v2374_v40  ;;  %vm736_vm11 = vcmp.eq.s32.totalorder %v2379_v31, 0  ;;  %v676_v25 = vsub.f32 %v2249_v47, %v2327_v45  ;;  %1269 = vpow2.f32 %v695_v10 }
  0xa3   :  { %v622_v54 = vadd.f32 %v621_v18, %v606_v42  ;;  %v699_v58 = vmul.f32 1.442695, %v674_v16  ;;  %vm737_vm12 = vcmp.eq.s32.totalorder %v2379_v31, 1  ;;  %v677_v2 = vsub.f32 %v2259_v9, %v2327_v45 }
  0xa4   :  { %v1258_v44 = vpop.eup %1257  ;;  %vm738_vm13 = vcmp.eq.s32.totalorder %v2379_v31, 2  ;;  %vm739_vm14 = vcmp.eq.s32.totalorder %v2379_v31, 3  ;;  %vm740_vm15 = vcmp.eq.s32.totalorder %v2379_v31, 4  ;;  %v505_v62 = vadd.f32 %v504_v20, %v2947_v52 }
  0xa5   :  { %v1260_v17 = vpop.eup %1259  ;;  %v623_v29 = vadd.f32 %v622_v54, %v607_v32  ;;  %1271 = vpow2.f32 %v697_v63  ;;  %v701_v35 = vmul.f32 1.442695, %v675_v60  ;;  %vm741_vm2 = vcmp.eq.s32.totalorder %v2379_v31, 5 }
  0xa6   :  { %vm742_vm3 = vcmp.eq.s32.totalorder %v2379_v31, 6  ;;  %v1262_v34 = vpop.eup %1261  ;;  %v717_v13 = vadd.f32 %v1260_v17, %v1258_v44  ;;  %vm743_vm0 = vcmp.eq.s32.totalorder %v2379_v31, 7  ;;  %vm744_vm1 = vcmp.eq.s32.totalorder %v2379_v31, 8 }
  0xa7   :  { %vm745_vm4 = vcmp.eq.s32.totalorder %v2379_v31, 9  ;;  %v1264_v15 = vpop.eup %1263  ;;  %v624_v28 = vadd.f32 %v623_v29, %v2948_v30  ;;  %v678_v55 = vsub.f32 %v2264_v21, %v2327_v45  ;;  %1273 = vpow2.f32 %v699_v58 }
  0xa8   :  { %v703_v26 = vmul.f32 1.442695, %v676_v25  ;;  %v679_v49 = vsub.f32 %v2269_v22, %v2327_v45  ;;  %v680_v39 = vsub.f32 %v2277_v4, %v2327_v45  ;;  %v681_v37 = vsub.f32 %v2289_v8, %v2327_v45 }
  0xa9   :  { %v718_v50 = vadd.f32 %v1262_v34, %v717_v13  ;;  %v1266_v56 = vpop.eup %1265  ;;  %v625_v6 = vsub.f32 %v505_v62, %v624_v28  ;;  %v682_v1 = vsub.f32 %v2294_v27, %v2327_v45  ;;  %1275 = vpow2.f32 %v701_v35 }
  0xaa   :  { %v705_v24 = vmul.f32 1.442695, %v677_v2  ;;  %vm746_vm5 = vcmp.eq.s32.totalorder %v2379_v31, 10  ;;  %vm747_vm6 = vcmp.eq.s32.totalorder %v2379_v31, 11  ;;  %vm748_vm7 = vcmp.eq.s32.totalorder %v2379_v31, 12 }
  0xab   :  { %v719_v36 = vadd.f32 %v1264_v15, %v718_v50  ;;  %v1268_v7 = vpop.eup %1267  ;;  %v2416_v12 = vadd.f32 %v625_v6, %v396_v61  ;;  %1277 = vpow2.f32 %v703_v26  ;;  %v707_v59 = vmul.f32 1.442695, %v678_v55 }
  0xac   :  { %v2419_v23 = vadd.s32 1, %v2379_v31  ;;  %v709_v43 = vmul.f32 1.442695, %v679_v49  ;;  %v711_v42 = vmul.f32 1.442695, %v680_v39  ;;  %v1270_v16 = vpop.eup %1269  ;;  %1279 = vpow2.f32 %v705_v24 }
  0xad   :  { %2949 = vst [vmem:[#allocation19_spill] sm:$0xff] %v2416_v12  ;;  %v713_v38 = vmul.f32 1.442695, %v681_v37  ;;  %v720_v0 = vadd.f32 %v1266_v56, %v719_v36  ;;  %v715_v10 = vmul.f32 1.442695, %v682_v1  ;;  %vm752_vm9 = vcmp.eq.s32.totalorder %v2379_v31, 16 }
  0xae   :  { %v753_v32 = vsel %vm736_vm11, %v2374_v40, 0.0  ;;  %v754_v20 = vsel %vm737_vm12, %v2374_v40, 0.0  ;;  %v755_v18 = vsel %vm738_vm13, %v2374_v40, 0.0  ;;  %v756_v63 = vsel %vm739_vm14, %v2374_v40, 0.0  ;;  %v2497_v36 = vld [vmem:[%s2863_s1 + $0x198] sm:$0xff] }
  0xaf   :  { %v721_v60 = vadd.f32 %v1268_v7, %v720_v0  ;;  %v1272_v48 = vpop.eup %1271  ;;  %1281 = vpow2.f32 %v707_v59  ;;  %v757_v61 = vsel %vm740_vm15, %v2374_v40, 0.0  ;;  %vm771_vm8 = vcmp.eq.s32.totalorder %v2419_v23, 0  ;;  %v2502_v7 = vld [vmem:[%s2863_s1 + $0x1b8] sm:$0xff] }
  0xb0   :  { %vm772_vm10 = vcmp.eq.s32.totalorder %v2419_v23, 1  ;;  %v2442_v25 = vsel %vm741_vm2, %v2374_v40, 0.0  ;;  %v2447_v58 = vsel %vm742_vm3, %v2374_v40, 0.0  ;;  %v2452_v44 = vsel %vm743_vm0, %v2374_v40, 0.0 }
  0xb1   :  { %v722_v54 = vadd.f32 %v1270_v16, %v721_v60  ;;  %v1274_v2 = vpop.eup %1273  ;;  %1283 = vpow2.f32 %v709_v43  ;;  %v2457_v17 = vsel %vm744_vm1, %v2374_v40, 0.0  ;;  %v2462_v52 = vsel %vm745_vm4, %v2374_v40, 0.0 }
  0xb2   :  { %vm773_vm11 = vcmp.eq.s32.totalorder %v2419_v23, 2  ;;  %v2468_v29 = vsel %vm746_vm5, %v2374_v40, 0.0  ;;  %v788_v35 = vsel %vm771_vm8, %v2385_v33, 0.0  ;;  %v789_v34 = vsel %vm772_vm10, %v2385_v33, 0.0 }
  0xb3   :  { %v723_v62 = vadd.f32 %v1272_v48, %v722_v54  ;;  %v1276_v13 = vpop.eup %1275  ;;  %1285 = vpow2.f32 %v711_v42  ;;  %v2475_v15 = vsel %vm747_vm6, %v2374_v40, 0.0  ;;  %vm774_vm12 = vcmp.eq.s32.totalorder %v2419_v23, 3  ;;  %v2531_v54 = vld [vmem:[%s2863_s1 + $0x1a8] sm:$0xff] }
  0xb4   :  { %vm787_vm13 = vcmp.eq.s32.totalorder %v2419_v23, 16  ;;  %v2482_v28 = vsel %vm748_vm7, %v2374_v40, 0.0  ;;  %v769_v55 = vsel %vm752_vm9, %v2374_v40, 0.0  ;;  %v790_v26 = vsel %vm773_vm11, %v2385_v33, 0.0 }
  0xb5   :  { %v724_v30 = vadd.f32 %v1274_v2, %v723_v62  ;;  %v1278_v49 = vpop.eup %1277  ;;  %1287 = vpow2.f32 %v713_v38  ;;  %vm775_vm14 = vcmp.eq.s32.totalorder %v2419_v23, 4  ;;  %v805_v39 = vadd.f32 %v788_v35, %v753_v32  ;;  %v2536_v2 = vld [vmem:[%s2863_s1 + $0x1c0] sm:$0xff]  ;;  %v2541_v62 = vld [vmem:[%s2863_s1 + $0x1c8] sm:$0xff] }
  0xb6   :  { %v806_v37 = vadd.f32 %v789_v34, %v754_v20  ;;  %1289 = vpow2.f32 %v715_v10  ;;  %v791_v56 = vsel %vm774_vm12, %v2385_v33, 0.0  ;;  %v804_v6 = vsel %vm787_vm13, %v2385_v33, 0.0  ;;  %v1280_v1 = vpop.eup %1279  ;;  %v2518_v20 = vld [vmem:[%s2863_s1 + $0x1a0] sm:$0xff] }
  0xb7   :  { %v725_v50 = vadd.f32 %v1276_v13, %v724_v30  ;;  %vm776_vm15 = vcmp.eq.s32.totalorder %v2419_v23, 5  ;;  %vm777_vm2 = vcmp.eq.s32.totalorder %v2419_v23, 6  ;;  %vm778_vm3 = vcmp.eq.s32.totalorder %v2419_v23, 7  ;;  %v2555_v13 = vld [vmem:[%s2863_s1 + $0x1b0] sm:$0xff] }
  0xb8   :  { %v807_v24 = vadd.f32 %v790_v26, %v755_v18  ;;  %vm779_vm0 = vcmp.eq.s32.totalorder %v2419_v23, 8  ;;  %vm780_vm1 = vcmp.eq.s32.totalorder %v2419_v23, 9  ;;  %v792_v43 = vsel %vm775_vm14, %v2385_v33, 0.0  ;;  %v2560_v30 = vld [vmem:[%s2863_s1 + $0x1d0] sm:$0xff] }
  0xb9   :  { %v726_v59 = vadd.f32 %v1278_v49, %v725_v50  ;;  %v1282_v42 = vpop.eup %1281  ;;  %v808_v38 = vadd.f32 %v791_v56, %v756_v63  ;;  %v821_v0 = vadd.f32 %v804_v6, %v769_v55  ;;  %v822_v16 = vmul.f32 %v2152_v11, %v805_v39  ;;  %v2565_v55 = vld [vmem:[%s2863_s1 + $0x1d8] sm:$0xff]  ;;  %v2576_v56 = vld [vmem:[%s2863_s1 + $0x1e0] sm:$0xff]  ;;  %v2581_v6 = vld [vmem:[%s2863_s1 + $0x1e8] sm:$0xff] }
  0xba   :  { %v823_v10 = vmul.f32 %v2157_v19, %v806_v37  ;;  %vm781_vm4 = vcmp.eq.s32.totalorder %v2419_v23, 10  ;;  %v793_v60 = vsel %vm776_vm15, %v2385_v33, 0.0  ;;  %v880_v18 = vmax.f32 %v2497_v36, %v2502_v7 }
  0xbb   :  { %v727_v32 = vadd.f32 %v1280_v1, %v726_v59  ;;  %v1284_v63 = vpop.eup %1283  ;;  %vm749_vm5 = vcmp.eq.s32.totalorder %v2379_v31, 13  ;;  %vm782_vm6 = vcmp.eq.s32.totalorder %v2419_v23, 11  ;;  %v794_v11 = vsel %vm777_vm2, %v2385_v33, 0.0 }
  0xbc   :  { %v809_v19 = vadd.f32 %v792_v43, %v757_v61  ;;  %v824_v48 = vmul.f32 %v2178_v46, %v807_v24  ;;  %v795_v46 = vsel %vm778_vm3, %v2385_v33, 0.0  ;;  %v796_v61 = vsel %vm779_vm0, %v2385_v33, 0.0 }
  0xbd   :  { %v728_v35 = vadd.f32 %v1282_v42, %v727_v32  ;;  %v797_v34 = vsel %vm780_vm1, %v2385_v33, 0.0  ;;  %v1286_v26 = vpop.eup %1285  ;;  %vm750_vm7 = vcmp.eq.s32.totalorder %v2379_v31, 14  ;;  %v810_v49 = vadd.f32 %v793_v60, %v2442_v25 }
  0xbe   :  { %v825_v39 = vmul.f32 %v2217_v5, %v808_v38  ;;  %v2571_v37 = vmul.f32 %v2294_v27, %v821_v0  ;;  %v839_v50 = vadd.f32 %v823_v10, %v822_v16  ;;  %v811_v24 = vadd.f32 %v794_v11, %v2447_v58  ;;  %v2587_v5 = vld [vmem:[%s2863_s1 + $0x1f0] sm:$0xff]  ;;  %v2592_v27 = vld [vmem:[%s2863_s1 + $0x1f8] sm:$0xff]  ;;  %v2602_v38 = vld [vmem:[%s2863_s1 + $0x200] sm:$0xff] }
  0xbf   :  { %v729_v1 = vadd.f32 %v1284_v63, %v728_v35  ;;  %v881_v25 = vmax.f32 %v2518_v20, %v2536_v2  ;;  %v882_v59 = vmax.f32 %v2531_v54, %v2541_v62  ;;  %v1288_v43 = vpop.eup %1287  ;;  %v826_v42 = vmul.f32 %v2162_v14, %v809_v19  ;;  %v2607_v0 = vld [vmem:[%s2863_s1 + $0x208] sm:$0xff]  ;;  %v2616_v63 = vld [vmem:[%s2863_s1 + $0x210] sm:$0xff]  ;;  %v2621_v11 = vld [vmem:[%s2863_s1 + $0x218] sm:$0xff] }
  0xc0   :  { %2950 = vst [vmem:[#allocation20_spill] sm:$0xff] %v2571_v37  ;;  %v840_v58 = vadd.f32 %v839_v50, %v824_v48  ;;  %v883_v16 = vmax.f32 %v2555_v13, %v2560_v30  ;;  %v884_v10 = vmax.f32 %v880_v18, %v2565_v55  ;;  %v1290_v32 = vpop.eup %1289  ;;  %v812_v14 = vadd.f32 %v795_v46, %v2452_v44 }
  0xc1   :  { %v730_v60 = vadd.f32 %v1286_v26, %v729_v1  ;;  %v885_v19 = vmax.f32 %v881_v25, %v2576_v56  ;;  %v886_v48 = vmax.f32 %v882_v59, %v2581_v6  ;;  %vm751_vm9 = vcmp.eq.s32.totalorder %v2379_v31, 15 }
  0xc2   :  { %v827_v18 = vmul.f32 %v2183_v41, %v810_v49  ;;  %v841_v35 = vadd.f32 %v840_v58, %v825_v39  ;;  %v887_v44 = vmax.f32 %v883_v16, %v2587_v5  ;;  %v888_v46 = vmax.f32 %v884_v10, %v2592_v27 }
  0xc3   :  { %v731_v26 = vadd.f32 %v1288_v43, %v730_v60  ;;  %v813_v50 = vadd.f32 %v796_v61, %v2457_v17  ;;  %v889_v1 = vmax.f32 %v885_v19, %v2602_v38  ;;  %v890_v12 = vmax.f32 %v886_v48, %v2607_v0 }
  0xc4   :  { %v828_v25 = vmul.f32 %v2188_v3, %v811_v24  ;;  %v842_v37 = vadd.f32 %v841_v35, %v826_v42  ;;  %v891_v59 = vmax.f32 %v887_v44, %v2616_v63  ;;  %v892_v45 = vmax.f32 %v888_v46, %v2621_v11  ;;  %v2952_v35 = vld [vmem:[#allocation5_spill] sm:$0xff] }
  0xc5   :  { %v732_v41 = vadd.f32 %v1290_v32, %v731_v26  ;;  %vm783_vm8 = vcmp.eq.s32.totalorder %v2419_v23, 12  ;;  %v798_v49 = vsel %vm781_vm4, %v2385_v33, 0.0  ;;  %v814_v17 = vadd.f32 %v797_v34, %v2462_v52 }
  0xc6   :  { %v829_v61 = vmul.f32 %v2227_v57, %v812_v14  ;;  %v843_v39 = vadd.f32 %v842_v37, %v827_v18  ;;  %v893_v43 = vmax.f32 %v892_v45, %v889_v1  ;;  %v894_v58 = vmax.f32 %v890_v12, %v891_v59 }
  0xc7   :  { %v766_v3 = vsel %vm749_vm5, %v2374_v40, 0.0  ;;  %vm784_vm10 = vcmp.eq.s32.totalorder %v2419_v23, 13  ;;  %vm785_vm11 = vcmp.eq.s32.totalorder %v2419_v23, 14  ;;  %v799_v24 = vsel %vm782_vm6, %v2385_v33, 0.0 }
  0xc8   :  { %v815_v42 = vadd.f32 %v798_v49, %v2468_v29  ;;  %v830_v52 = vmul.f32 %v2232_v53, %v813_v50  ;;  %v844_v57 = vadd.f32 %v843_v39, %v828_v25  ;;  %v2651_v34 = vmax.f32 %v893_v43, %v894_v58 }
  0xc9   :  { %1291 = vlog2.f32 %v732_v41  ;;  %v767_v45 = vsel %vm750_vm7, %v2374_v40, 0.0  ;;  %vm786_vm12 = vcmp.eq.s32.totalorder %v2419_v23, 15  ;;  %v800_v12 = vsel %vm783_vm8, %v2385_v33, 0.0 }
  0xca   :  { %v801_v37 = vsel %vm784_vm10, %v2385_v33, 0.0  ;;  %v816_v29 = vadd.f32 %v799_v24, %v2475_v15  ;;  %v831_v53 = vmul.f32 %v2237_v51, %v814_v17  ;;  %v845_v16 = vadd.f32 %v844_v57, %v829_v61  ;;  %v2951_v15 = vld [vmem:[#allocation3_spill] sm:$0xff] }
  0xcb   :  { %v802_v10 = vsel %vm785_vm11, %v2385_v33, 0.0  ;;  %v896_v32 = vsub.f32 %v2497_v36, %v2651_v34  ;;  %v897_v60 = vsub.f32 %v2518_v20, %v2651_v34  ;;  %v898_v14 = vsub.f32 %v2531_v54, %v2651_v34 }
  0xcc   :  { %v817_v19 = vadd.f32 %v800_v12, %v2482_v28  ;;  %v832_v48 = vmul.f32 %v2249_v47, %v815_v42  ;;  %v846_v18 = vadd.f32 %v845_v16, %v830_v52  ;;  %v899_v51 = vsub.f32 %v2555_v13, %v2651_v34 }
  0xcd   :  { %v2953_v44 = vsub.f32 %v2951_v15, %v2952_v35  ;;  %v768_v26 = vsel %vm751_vm9, %v2374_v40, 0.0  ;;  %v818_v50 = vadd.f32 %v801_v37, %v766_v3  ;;  %v803_v28 = vsel %vm786_vm12, %v2385_v33, 0.0  ;;  %v2955_v35 = vld [vmem:[#allocation20_spill] sm:$0xff] }
  0xce   :  { %v833_v47 = vmul.f32 %v2259_v9, %v816_v29  ;;  %v847_v1 = vadd.f32 %v846_v18, %v831_v53  ;;  %v900_v25 = vsub.f32 %v2502_v7, %v2651_v34  ;;  %v819_v59 = vadd.f32 %v802_v10, %v767_v45 }
  0xcf   :  { %v2677_v46 = vmax.f32 %v2953_v44, 0.0  ;;  %v913_v41 = vmul.f32 1.442695, %v896_v32  ;;  %v915_v49 = vmul.f32 1.442695, %v897_v60  ;;  %v834_v61 = vmul.f32 %v2264_v21, %v817_v19 }
  0xd0   :  { %v917_v17 = vmul.f32 1.442695, %v898_v14  ;;  %v848_v39 = vadd.f32 %v847_v1, %v832_v48  ;;  %v901_v40 = vsub.f32 %v2536_v2, %v2651_v34  ;;  %v919_v31 = vmul.f32 1.442695, %v899_v51  ;;  %v2954_v14 = vld [vmem:[#allocation7_spill] sm:$0xff] }
  0xd1   :  { %v168_v23 = vmin.f32 %v2677_v46, 15.99  ;;  %v820_v33 = vadd.f32 %v803_v28, %v768_v26  ;;  %v835_v9 = vmul.f32 %v2269_v22, %v818_v50  ;;  %1293 = vpow2.f32 %v913_v41 }
  0xd2   :  { %v849_v43 = vadd.f32 %v848_v39, %v833_v47  ;;  %v902_v58 = vsub.f32 %v2541_v62, %v2651_v34  ;;  %1295 = vpow2.f32 %v915_v49  ;;  %v921_v3 = vmul.f32 1.442695, %v900_v25  ;;  %v2956_v39 = vld [vmem:[#allocation19_spill] sm:$0xff] }
  0xd3   :  { %v1292_v24 = vpop.eup %1291  ;;  %v836_v21 = vmul.f32 %v2277_v4, %v819_v59  ;;  %1297 = vpow2.f32 %v917_v17  ;;  %v903_v52 = vsub.f32 %v2560_v30, %v2651_v34  ;;  %v923_v57 = vmul.f32 1.442695, %v901_v40 }
  0xd4   :  { %v850_v42 = vadd.f32 %v849_v43, %v834_v61  ;;  %1299 = vpow2.f32 %v919_v31  ;;  %v837_v45 = vmul.f32 %v2289_v8, %v820_v33  ;;  %v857_v22 = vfloor.f32 %v168_v23 }
  0xd5   :  { %v904_v12 = vsub.f32 %v2565_v55, %v2651_v34  ;;  %v734_v37 = vmul.f32 0.6931472, %v1292_v24  ;;  %1301 = vpow2.f32 %v921_v3  ;;  %v925_v53 = vmul.f32 1.442695, %v902_v58 }
  0xd6   :  { %v851_v29 = vadd.f32 %v850_v42, %v835_v9  ;;  %v905_v4 = vsub.f32 %v2576_v56, %v2651_v34  ;;  %1303 = vpow2.f32 %v923_v57  ;;  %v927_v10 = vmul.f32 1.442695, %v903_v52 }
  0xd7   :  { %v1165_v32 = vtrunc.f32 %v857_v22  ;;  %v906_v60 = vsub.f32 %v2581_v6, %v2651_v34  ;;  %v735_v8 = vadd.f32 %v734_v37, %v2954_v14  ;;  %1305 = vpow2.f32 %v925_v53 }
  0xd8   :  { %v852_v16 = vadd.f32 %v851_v29, %v836_v21  ;;  %v929_v48 = vmul.f32 1.442695, %v904_v12  ;;  %v859_v51 = vadd.f32 1.0, %v857_v22  ;;  %v907_v46 = vsub.f32 %v2587_v5, %v2651_v34 }
  0xd9   :  { %1307 = vpow2.f32 %v927_v10  ;;  %v931_v26 = vmul.f32 1.442695, %v905_v4  ;;  %v2709_v28 = vcvt.f32.s32 %v1165_v32  ;;  %v908_v59 = vsub.f32 %v2592_v27, %v2651_v34 }
  0xda   :  { %v853_v19 = vadd.f32 %v852_v16, %v837_v45  ;;  %1309 = vpow2.f32 %v929_v48  ;;  %v933_v41 = vmul.f32 1.442695, %v906_v60  ;;  %v2713_v49 = vsub.f32 %v859_v51, %v168_v23 }
  0xdb   :  { %v1294_v18 = vpop.eup %1293  ;;  %v909_v31 = vsub.f32 %v2602_v38, %v2651_v34  ;;  %1311 = vpow2.f32 %v931_v26  ;;  %v935_v33 = vmul.f32 1.442695, %v907_v46  ;;  %v910_v58 = vsub.f32 %v2607_v0, %v2651_v34 }
  0xdc   :  { %v1296_v15 = vpop.eup %1295  ;;  %v854_v44 = vadd.f32 %v853_v19, %v2955_v35  ;;  %1313 = vpow2.f32 %v933_v41  ;;  %v937_v3 = vmul.f32 1.442695, %v908_v59  ;;  %v2723_v23 = vadd.s32 1, %v2709_v28 }
  0xdd   :  { %v1298_v50 = vpop.eup %1297  ;;  %v947_v47 = vadd.f32 %v1296_v15, %v1294_v18  ;;  %v911_v24 = vsub.f32 %v2616_v63, %v2651_v34  ;;  %vm966_vm13 = vcmp.eq.s32.totalorder %v2709_v28, 0  ;;  %v2729_v52 = vsub.f32 1.0, %v2713_v49 }
  0xde   :  { %v1300_v1 = vpop.eup %1299  ;;  %v855_v25 = vsub.f32 %v735_v8, %v854_v44  ;;  %v912_v57 = vsub.f32 %v2621_v11, %v2651_v34  ;;  %1315 = vpow2.f32 %v935_v33  ;;  %v939_v45 = vmul.f32 1.442695, %v909_v31 }
  0xdf   :  { %v948_v17 = vadd.f32 %v1298_v50, %v947_v47  ;;  %v1302_v61 = vpop.eup %1301  ;;  %vm967_vm14 = vcmp.eq.s32.totalorder %v2709_v28, 1  ;;  %vm968_vm15 = vcmp.eq.s32.totalorder %v2709_v28, 2  ;;  %vm969_vm2 = vcmp.eq.s32.totalorder %v2709_v28, 3 }
  0xe0   :  { %v2716_v40 = vadd.f32 %v855_v25, %v2956_v39  ;;  %v1304_v43 = vpop.eup %1303  ;;  %1317 = vpow2.f32 %v937_v3  ;;  %v941_v37 = vmul.f32 1.442695, %v910_v58  ;;  %vm1001_vm3 = vcmp.eq.s32.totalorder %v2723_v23, 0 }
  0xe1   :  { %v949_v9 = vadd.f32 %v1300_v1, %v948_v17  ;;  %v1306_v42 = vpop.eup %1305  ;;  %vm1002_vm0 = vcmp.eq.s32.totalorder %v2723_v23, 1  ;;  %v943_v29 = vmul.f32 1.442695, %v911_v24  ;;  %vm970_vm1 = vcmp.eq.s32.totalorder %v2709_v28, 4 }
  0xe2   :  { %vm971_vm4 = vcmp.eq.s32.totalorder %v2709_v28, 5  ;;  %1319 = vpow2.f32 %v939_v45  ;;  %v945_v4 = vmul.f32 1.442695, %v912_v57  ;;  %v983_v10 = vsel %vm966_vm13, %v2713_v49, 0.0 }
  0xe3   :  { %v950_v21 = vadd.f32 %v1302_v61, %v949_v9  ;;  %v1308_v12 = vpop.eup %1307  ;;  %vm1003_vm5 = vcmp.eq.s32.totalorder %v2723_v23, 2  ;;  %v984_v60 = vsel %vm967_vm14, %v2713_v49, 0.0  ;;  %v1018_v14 = vsel %vm1001_vm3, %v2729_v52, 0.0 }
  0xe4   :  { %v1310_v16 = vpop.eup %1309  ;;  %v1019_v8 = vsel %vm1002_vm0, %v2729_v52, 0.0  ;;  %1321 = vpow2.f32 %v941_v37  ;;  %vm982_vm6 = vcmp.eq.s32.totalorder %v2709_v28, 16  ;;  %vm1004_vm7 = vcmp.eq.s32.totalorder %v2723_v23, 3 }
  0xe5   :  { %v951_v22 = vadd.f32 %v1304_v43, %v950_v21  ;;  %v1312_v19 = vpop.eup %1311  ;;  %vm1017_vm9 = vcmp.eq.s32.totalorder %v2723_v23, 16  ;;  %v985_v18 = vsel %vm968_vm15, %v2713_v49, 0.0  ;;  %v986_v51 = vsel %vm969_vm2, %v2713_v49, 0.0 }
  0xe6   :  { %v1020_v15 = vsel %vm1003_vm5, %v2729_v52, 0.0  ;;  %v1314_v35 = vpop.eup %1313  ;;  %1323 = vpow2.f32 %v943_v29  ;;  %vm1005_vm8 = vcmp.eq.s32.totalorder %v2723_v23, 4  ;;  %v1035_v44 = vadd.f32 %v1018_v14, %v983_v10 }
  0xe7   :  { %v952_v53 = vadd.f32 %v1306_v42, %v951_v22  ;;  %v1036_v46 = vadd.f32 %v1019_v8, %v984_v60  ;;  %v999_v50 = vsel %vm982_vm6, %v2713_v49, 0.0  ;;  %v1021_v47 = vsel %vm1004_vm7, %v2729_v52, 0.0 }
  0xe8   :  { %v1034_v1 = vsel %vm1017_vm9, %v2729_v52, 0.0  ;;  %v1316_v25 = vpop.eup %1315  ;;  %1325 = vpow2.f32 %v945_v4  ;;  %vm972_vm10 = vcmp.eq.s32.totalorder %v2709_v28, 6  ;;  %vm1006_vm11 = vcmp.eq.s32.totalorder %v2723_v23, 5 }
  0xe9   :  { %v953_v32 = vadd.f32 %v1308_v12, %v952_v53  ;;  %v1037_v59 = vadd.f32 %v1020_v15, %v985_v18  ;;  %v987_v17 = vsel %vm970_vm1, %v2713_v49, 0.0  ;;  %vm1007_vm12 = vcmp.eq.s32.totalorder %v2723_v23, 6 }
  0xea   :  { %v1022_v61 = vsel %vm1005_vm8, %v2729_v52, 0.0  ;;  %v1318_v39 = vpop.eup %1317  ;;  %v1038_v31 = vadd.f32 %v1021_v47, %v986_v51  ;;  %v1051_v33 = vadd.f32 %v1034_v1, %v999_v50  ;;  %v1052_v9 = vmul.f32 %v2497_v36, %v1035_v44 }
  0xeb   :  { %v954_v48 = vadd.f32 %v1310_v16, %v953_v32  ;;  %v1053_v43 = vmul.f32 %v2518_v20, %v1036_v46  ;;  %vm973_vm13 = vcmp.eq.s32.totalorder %v2709_v28, 7  ;;  %v988_v3 = vsel %vm971_vm4, %v2713_v49, 0.0 }
  0xec   :  { %v1023_v24 = vsel %vm1006_vm11, %v2729_v52, 0.0  ;;  %v1320_v21 = vpop.eup %1319  ;;  %vm974_vm14 = vcmp.eq.s32.totalorder %v2709_v28, 8  ;;  %vm1008_vm15 = vcmp.eq.s32.totalorder %v2723_v23, 7  ;;  %v1039_v42 = vadd.f32 %v1022_v61, %v987_v17 }
  0xed   :  { %v955_v26 = vadd.f32 %v1312_v19, %v954_v48  ;;  %v1054_v57 = vmul.f32 %v2531_v54, %v1037_v59  ;;  %v989_v20 = vsel %vm972_vm10, %v2713_v49, 0.0  ;;  %vm1009_vm2 = vcmp.eq.s32.totalorder %v2723_v23, 8 }
  0xee   :  { %v1024_v45 = vsel %vm1007_vm12, %v2729_v52, 0.0  ;;  %v1322_v22 = vpop.eup %1321  ;;  %v1040_v12 = vadd.f32 %v1023_v24, %v988_v3  ;;  %v1055_v37 = vmul.f32 %v2555_v13, %v1038_v31  ;;  %v2789_v29 = vmul.f32 %v2621_v11, %v1051_v33 }
  0xef   :  { %v956_v41 = vadd.f32 %v1314_v35, %v955_v26  ;;  %v1069_v53 = vadd.f32 %v1053_v43, %v1052_v9  ;;  %vm975_vm3 = vcmp.eq.s32.totalorder %v2709_v28, 9  ;;  %v990_v16 = vsel %vm973_vm13, %v2713_v49, 0.0 }
  0xf0   :  { %v1025_v4 = vsel %vm1008_vm15, %v2729_v52, 0.0  ;;  %v1324_v10 = vpop.eup %1323  ;;  %vm1010_vm0 = vcmp.eq.s32.totalorder %v2723_v23, 9  ;;  %v1041_v32 = vadd.f32 %v1024_v45, %v989_v20  ;;  %v1056_v60 = vmul.f32 %v2502_v7, %v1039_v42 }
  0xf1   :  { %v957_v58 = vadd.f32 %v1316_v25, %v956_v41  ;;  %v1070_v13 = vadd.f32 %v1069_v53, %v1054_v57  ;;  %vm976_vm1 = vcmp.eq.s32.totalorder %v2709_v28, 10  ;;  %v991_v11 = vsel %vm974_vm14, %v2713_v49, 0.0 }
  0xf2   :  { %v1026_v8 = vsel %vm1009_vm2, %v2729_v52, 0.0  ;;  %v1326_v19 = vpop.eup %1325  ;;  %vm1011_vm4 = vcmp.eq.s32.totalorder %v2723_v23, 10  ;;  %v1042_v48 = vadd.f32 %v1025_v4, %v990_v16  ;;  %v1057_v18 = vmul.f32 %v2536_v2, %v1040_v12 }
  0xf3   :  { %v958_v36 = vadd.f32 %v1318_v39, %v957_v58  ;;  %v1071_v51 = vadd.f32 %v1070_v13, %v1055_v37  ;;  %vm977_vm5 = vcmp.eq.s32.totalorder %v2709_v28, 11  ;;  %v992_v15 = vsel %vm975_vm3, %v2713_v49, 0.0 }
  0xf4   :  { %v1027_v35 = vsel %vm1010_vm0, %v2729_v52, 0.0  ;;  %vm1012_vm6 = vcmp.eq.s32.totalorder %v2723_v23, 11  ;;  %v1043_v44 = vadd.f32 %v1026_v8, %v991_v11  ;;  %v1058_v46 = vmul.f32 %v2541_v62, %v1041_v32 }
  0xf5   :  { %v959_v54 = vadd.f32 %v1320_v21, %v958_v36  ;;  %v1072_v26 = vadd.f32 %v1071_v51, %v1056_v60  ;;  %vm978_vm7 = vcmp.eq.s32.totalorder %v2709_v28, 12  ;;  %v993_v2 = vsel %vm976_vm1, %v2713_v49, 0.0 }
  0xf6   :  { %v1028_v47 = vsel %vm1011_vm4, %v2729_v52, 0.0  ;;  %vm1013_vm9 = vcmp.eq.s32.totalorder %v2723_v23, 12  ;;  %v1044_v1 = vadd.f32 %v1027_v35, %v992_v15  ;;  %v1059_v25 = vmul.f32 %v2560_v30, %v1042_v48 }
  0xf7   :  { %v960_v14 = vadd.f32 %v1322_v22, %v959_v54  ;;  %v1073_v59 = vadd.f32 %v1072_v26, %v1057_v18  ;;  %vm979_vm8 = vcmp.eq.s32.totalorder %v2709_v28, 13  ;;  %v994_v62 = vsel %vm977_vm5, %v2713_v49, 0.0 }
  0xf8   :  { %v1029_v41 = vsel %vm1012_vm6, %v2729_v52, 0.0  ;;  %vm1014_vm10 = vcmp.eq.s32.totalorder %v2723_v23, 13  ;;  %v1045_v17 = vadd.f32 %v1028_v47, %v993_v2  ;;  %v1060_v61 = vmul.f32 %v2565_v55, %v1043_v44 }
  0xf9   :  { %v961_v7 = vadd.f32 %v1324_v10, %v960_v14  ;;  %v1074_v39 = vadd.f32 %v1073_v59, %v1058_v46  ;;  %vm980_vm11 = vcmp.eq.s32.totalorder %v2709_v28, 14  ;;  %v995_v30 = vsel %vm978_vm7, %v2713_v49, 0.0 }
  0xfa   :  { %v1030_v31 = vsel %vm1013_vm9, %v2729_v52, 0.0  ;;  %vm1015_vm12 = vcmp.eq.s32.totalorder %v2723_v23, 14  ;;  %v1046_v33 = vadd.f32 %v1029_v41, %v994_v62  ;;  %v1061_v9 = vmul.f32 %v2576_v56, %v1044_v1 }
  0xfb   :  { %v962_v50 = vadd.f32 %v1326_v19, %v961_v7  ;;  %v1075_v43 = vadd.f32 %v1074_v39, %v1059_v25  ;;  %vm981_vm13 = vcmp.eq.s32.totalorder %v2709_v28, 15  ;;  %v996_v55 = vsel %vm979_vm8, %v2713_v49, 0.0 }
  0xfc   :  { %v1031_v58 = vsel %vm1014_vm10, %v2729_v52, 0.0  ;;  %vm1016_vm14 = vcmp.eq.s32.totalorder %v2723_v23, 15  ;;  %v1047_v3 = vadd.f32 %v1030_v31, %v995_v30  ;;  %v1062_v24 = vmul.f32 %v2581_v6, %v1045_v17 }
  0xfd   :  { %1327 = vlog2.f32 %v962_v50  ;;  %v1076_v21 = vadd.f32 %v1075_v43, %v1060_v61  ;;  %v997_v42 = vsel %vm980_vm11, %v2713_v49, 0.0  ;;  %v1032_v57 = vsel %vm1015_vm12, %v2729_v52, 0.0 }
  0xfe   :  { %v1048_v56 = vadd.f32 %v1031_v58, %v996_v55  ;;  %v1063_v36 = vmul.f32 %v2587_v5, %v1046_v33  ;;  %v998_v45 = vsel %vm981_vm13, %v2713_v49, 0.0  ;;  %v1033_v28 = vsel %vm1016_vm14, %v2729_v52, 0.0 }
  0xff   :  { %v1077_v20 = vadd.f32 %v1076_v21, %v1061_v9  ;;  %v1049_v22 = vadd.f32 %v1032_v57, %v997_v42  ;;  %v1064_v12 = vmul.f32 %v2592_v27, %v1047_v3  ;;  %v1050_v37 = vadd.f32 %v1033_v28, %v998_v45 }
 0x100   :  { %v1065_v6 = vmul.f32 %v2602_v38, %v1048_v56  ;;  %v1329_v38 = vld [vmem:[%s2862_s0 + $0x50] sm:$0xff] }
 0x101   :  { %v1078_v23 = vadd.f32 %v1077_v20, %v1062_v24  ;;  %v1066_v16 = vmul.f32 %v2607_v0, %v1049_v22  ;;  %v1067_v5 = vmul.f32 %v2616_v63, %v1050_v37 }
 0x103   :  { %v1079_v53 = vadd.f32 %v1078_v23, %v1063_v36 }
 0x105   :  { %v1080_v4 = vadd.f32 %v1079_v53, %v1064_v12 }
 0x107   :  { %v1328_v54 = vpop.eup %1327  ;;  %v1081_v32 = vadd.f32 %v1080_v4, %v1065_v6 }
 0x108   :  { %v964_v10 = vmul.f32 0.6931472, %v1328_v54 }
 0x109   :  { %v1082_v60 = vadd.f32 %v1081_v32, %v1066_v16 }
 0x10a   :  { %v965_v49 = vadd.f32 %v964_v10, %v2651_v34 }
 0x10b   :  { %v1083_v52 = vadd.f32 %v1082_v60, %v1067_v5 }
 0x10d   :  { %v1084_v13 = vadd.f32 %v1083_v52, %v2789_v29 }
 0x10f   :  { %v1085_v27 = vsub.f32 %v965_v49, %v1084_v13 }
 0x111   :  { %v1086_v14 = vadd.f32 %v1085_v27, %v2716_v40 }
 0x113   :  { %v1087_v11 = vmul.f32 0.25, %v1086_v14 }
 0x115   :  { %v1088_v0 = vmul.f32 %v1329_v38, %v1087_v11 }
 0x117   :  { %1158 = vst [vmem:[%s2864_s2 + $0x8] sm:$0xff] %v1088_v0 }

</bundles_post_ra>
